<compile_context>
chip_gen: v6e
topology: v6e:2x2x1
jax: 0.10.0
libtpu: 0.0.40
codegen_flags: <defaults>
</compile_context>

<pallas_src>
import functools
import math

import jax
import jax.numpy as jnp
import numpy as np
from jax import lax
from jax.experimental import pallas as pl
from jax.experimental.pallas import tpu as pltpu  # noqa: F401  (kept for TPU-specific tuning hooks)

# ---- model hyper-parameters (small, consistent with SimpleLLM scaled down) --
VOCAB = 48
D_MODEL = 32
N_HEADS = 4
HEAD_DIM = D_MODEL // N_HEADS
D_FF = 4 * D_MODEL
N_LAYERS = 2
MAX_SEQ = 16
LN_EPS = 1e-5          # PyTorch nn.LayerNorm default eps
V_PAD = 128            # lane-dense slab width / padded vocab width
NEG_INF = -1e30        # additive causal-mask bias (avoids -inf NaN pitfalls)


# ---------------------------------------------------------------------------
# Parameter slab layout: every parameter lives at a static, 8-row-aligned
# (row, col) offset of one lane-dense (SLAB_ROWS, 128) f32 array.
# ---------------------------------------------------------------------------
def _build_slab_layout():
    layout = {}
    row = 0

    def alloc(name, nrows, ncols):
        nonlocal row
        layout[name] = (row, nrows, ncols)
        row += ((nrows + 7) // 8) * 8          # keep every param 8-row aligned

    alloc("tok_emb", V_PAD, D_MODEL)           # token table padded to 128 rows
    alloc("pos_emb", MAX_SEQ, D_MODEL)
    alloc("w_out", D_MODEL, V_PAD)             # vocab columns padded to 128
    alloc("b_out", 1, V_PAD)
    for l in range(N_LAYERS):
        alloc(f"wqkv_{l}", D_MODEL, 3 * D_MODEL)
        alloc(f"bqkv_{l}", 1, 3 * D_MODEL)
        alloc(f"wo_{l}", D_MODEL, D_MODEL)
        alloc(f"bo_{l}", 1, D_MODEL)
        alloc(f"g1_{l}", 1, D_MODEL)
        alloc(f"be1_{l}", 1, D_MODEL)
        alloc(f"w1_{l}", D_MODEL, D_FF)
        alloc(f"b1_{l}", 1, D_FF)
        alloc(f"w2_{l}", D_FF, D_MODEL)
        alloc(f"b2_{l}", 1, D_MODEL)
        alloc(f"g2_{l}", 1, D_MODEL)
        alloc(f"be2_{l}", 1, D_MODEL)
    return layout, row


SLAB_LAYOUT, SLAB_ROWS = _build_slab_layout()


def _slab(slab_ref, name):
    """Load one parameter from the slab at its static offset (point of use)."""
    r0, nr, nc = SLAB_LAYOUT[name]
    return slab_ref[r0:r0 + nr, 0:nc]


# ---------------------------------------------------------------------------
# Kernel
# ---------------------------------------------------------------------------
def _layernorm(x, gamma, beta):
    mean = jnp.mean(x, axis=-1, keepdims=True)
    var = jnp.mean((x - mean) ** 2, axis=-1, keepdims=True)
    return (x - mean) * lax.rsqrt(var + LN_EPS) * gamma + beta


def _transformer_block(x, slab_ref, l, mask_bias, B, S):
    """One TransformerBlock on a flat (B*S, D) activation slab, all f32."""
    BS = B * S

    # Fused QKV: single (BS, D) @ (D, 3D) matmul; 1/sqrt(hd) folded into Q part.
    qkv = (jnp.dot(x, _slab(slab_ref, f"wqkv_{l}"),
                   preferred_element_type=jnp.float32)
           + _slab(slab_ref, f"bqkv_{l}"))                           # (BS, 3D)
    qkv3 = qkv.reshape(B, S, 3 * D_MODEL)

    ctx_heads = []
    for h in range(N_HEADS):                                         # static unroll
        q = qkv3[:, :, h * HEAD_DIM:(h + 1) * HEAD_DIM]              # (B, S, hd)
        k = qkv3[:, :, D_MODEL + h * HEAD_DIM:D_MODEL + (h + 1) * HEAD_DIM]
        v = qkv3[:, :, 2 * D_MODEL + h * HEAD_DIM:2 * D_MODEL + (h + 1) * HEAD_DIM]

        s = jnp.einsum("bqd,bkd->bqk", q, k,
                       preferred_element_type=jnp.float32) + mask_bias   # (B,S,S)
        s = s - jnp.max(s, axis=-1, keepdims=True)
        p = jnp.exp(s)
        p = p * pl.reciprocal(jnp.sum(p, axis=-1, keepdims=True), approx=True)
        ctx_heads.append(jnp.einsum("bqk,bkd->bqd", p, v,
                                    preferred_element_type=jnp.float32))  # (B,S,hd)

    ctx = jnp.concatenate(ctx_heads, axis=-1).reshape(BS, D_MODEL)   # (BS, D)
    attn = (jnp.dot(ctx, _slab(slab_ref, f"wo_{l}"),
                    preferred_element_type=jnp.float32)
            + _slab(slab_ref, f"bo_{l}"))                            # (BS, D)

    x1 = _layernorm(x + attn,
                    _slab(slab_ref, f"g1_{l}"), _slab(slab_ref, f"be1_{l}"))
    h1 = jnp.maximum(
        jnp.dot(x1, _slab(slab_ref, f"w1_{l}"),
                preferred_element_type=jnp.float32) + _slab(slab_ref, f"b1_{l}"),
        0.0)                                                         # ReLU, (BS, D_FF)
    ff = (jnp.dot(h1, _slab(slab_ref, f"w2_{l}"),
                  preferred_element_type=jnp.float32)
          + _slab(slab_ref, f"b2_{l}"))
    return _layernorm(x1 + ff,
                      _slab(slab_ref, f"g2_{l}"), _slab(slab_ref, f"be2_{l}"))


def fused_llm_kernel(tok_ref, slab_ref, o_ref, *, B, S):
    BS = B * S

    # In-kernel embedding gather: exact one-hot matmul against the padded table.
    tok = tok_ref[...]                                               # (BS, 1) int32
    onehot = (lax.broadcasted_iota(jnp.int32, (BS, V_PAD), 1) == tok
              ).astype(jnp.float32)                                  # (BS, 128)
    x = jnp.dot(onehot, _slab(slab_ref, "tok_emb"),
                preferred_element_type=jnp.float32)                  # (BS, D)

    pos_r0, _, _ = SLAB_LAYOUT["pos_emb"]
    pos = slab_ref[pos_r0:pos_r0 + S, 0:D_MODEL]                     # (S, D)
    x = x + jnp.concatenate([pos] * B, axis=0)                       # tile over batch

    # Additive causal mask built once, reused by every head / layer.
    rows = lax.broadcasted_iota(jnp.int32, (B, S, S), 1)
    cols = lax.broadcasted_iota(jnp.int32, (B, S, S), 2)
    mask_bias = jnp.where(cols <= rows, 0.0, NEG_INF).astype(jnp.float32)

    for l in range(N_LAYERS):                                        # static unroll
        x = _transformer_block(x, slab_ref, l, mask_bias, B, S)

    # Lane-dense (BS, 128) logits store; wrapper slices back to VOCAB.
    o_ref[...] = (jnp.dot(x, _slab(slab_ref, "w_out"),
                          preferred_element_type=jnp.float32)
                  + _slab(slab_ref, "b_out"))


# ---------------------------------------------------------------------------
# Wrapper: one fused pallas_call, no grid (whole problem in one invocation).
# ---------------------------------------------------------------------------
def simple_llm_forward(tokens, slab):
    """tokens (B, S) int32 -> logits (B, S, VOCAB)."""
    B, S = tokens.shape
    assert S <= MAX_SEQ
    tok_flat = tokens.reshape(B * S, 1).astype(jnp.int32)
    logits_pad = pl.pallas_call(
        functools.partial(fused_llm_kernel, B=B, S=S),
        out_shape=jax.ShapeDtypeStruct((B * S, V_PAD), jnp.float32),
    )(tok_flat, slab)
    return logits_pad.reshape(B, S, V_PAD)[..., :VOCAB]


# ---------------------------------------------------------------------------
# Parameters: canonical (PyTorch-equivalent) init + host-side slab packing
# ---------------------------------------------------------------------------
def init_params(key):
    keys = iter(jax.random.split(key, 64))
    w = lambda shape: 0.02 * jax.random.normal(next(keys), shape, jnp.float32)
    bias = lambda n: 0.1 * jax.random.normal(next(keys), (1, n), jnp.float32)
    gamma = lambda n: 1.0 + 0.1 * jax.random.normal(next(keys), (1, n), jnp.float32)

    params = {
        "tok_emb": w((VOCAB, D_MODEL)),
        "pos_emb": w((MAX_SEQ, D_MODEL)),
        "w_out": w((D_MODEL, VOCAB)),
        "b_out": bias(VOCAB),
        "layers": [],
    }
    for _ in range(N_LAYERS):
        params["layers"].append(dict(
            wq=w((D_MODEL, D_MODEL)), bq=bias(D_MODEL),
            wk=w((D_MODEL, D_MODEL)), bk=bias(D_MODEL),
            wv=w((D_MODEL, D_MODEL)), bv=bias(D_MODEL),
            wo=w((D_MODEL, D_MODEL)), bo=bias(D_MODEL),
            g1=gamma(D_MODEL), be1=bias(D_MODEL),
            w1=w((D_MODEL, D_FF)), b1=bias(D_FF),
            w2=w((D_FF, D_MODEL)), b2=bias(D_MODEL),
            g2=gamma(D_MODEL), be2=bias(D_MODEL),
        ))
    return params


def prepare_slab(params):
    """Pack all weights into one lane-dense (SLAB_ROWS, 128) f32 slab (host-side, once)."""
    slab = np.zeros((SLAB_ROWS, V_PAD), np.float32)

    def put(name, arr):
        arr = np.asarray(arr, np.float32)
        r0, nr, nc = SLAB_LAYOUT[name]
        assert arr.shape == (nr, nc), (name, arr.shape, (nr, nc))
        slab[r0:r0 + nr, :nc] = arr

    scale = 1.0 / math.sqrt(HEAD_DIM)
    put("tok_emb", np.pad(np.asarray(params["tok_emb"]),
                          ((0, V_PAD - VOCAB), (0, 0))))
    put("pos_emb", params["pos_emb"])
    put("w_out", np.pad(np.asarray(params["w_out"]),
                        ((0, 0), (0, V_PAD - VOCAB))))
    put("b_out", np.pad(np.asarray(params["b_out"]),
                        ((0, 0), (0, V_PAD - VOCAB))))
    for l, L in enumerate(params["layers"]):
        put(f"wqkv_{l}", np.concatenate([np.asarray(L["wq"]) * scale,
                                         np.asarray(L["wk"]),
                                         np.asarray(L["wv"])], axis=1))
        put(f"bqkv_{l}", np.concatenate([np.asarray(L["bq"]) * scale,
                                         np.asarray(L["bk"]),
                                         np.asarray(L["bv"])], axis=1))
        put(f"wo_{l}", L["wo"])
        put(f"bo_{l}", L["bo"])
        put(f"g1_{l}", L["g1"])
        put(f"be1_{l}", L["be1"])
        put(f"w1_{l}", L["w1"])
        put(f"b1_{l}", L["b1"])
        put(f"w2_{l}", L["w2"])
        put(f"b2_{l}", L["b2"])
        put(f"g2_{l}", L["g2"])
        put(f"be2_{l}", L["be2"])
    return jnp.asarray(slab)


# ---------------------------------------------------------------------------
# Pure-JAX reference (mirrors the PyTorch module) for a correctness check
# ---------------------------------------------------------------------------
def _ln_ref(x, g, b):
    m = jnp.mean(x, axis=-1, keepdims=True)
    v = jnp.mean((x - m) ** 2, axis=-1, keepdims=True)
    return (x - m) * lax.rsqrt(v + LN_EPS) * g + b


def reference_forward(tokens, params):
    P = lax.Precision.HIGHEST
    B, S = tokens.shape
    x = jnp.take(params["tok_emb"], tokens, axis=0) + params["pos_emb"][:S][None]
    mask = jnp.tril(jnp.ones((S, S), dtype=bool))
    for L in params["layers"]:
        q = jnp.dot(x, L["wq"], precision=P) + L["bq"]
        k = jnp.dot(x, L["wk"], precision=P) + L["bk"]
        v = jnp.dot(x, L["wv"], precision=P) + L["bv"]
        q = q.reshape(B, S, N_HEADS, HEAD_DIM).transpose(0, 2, 1, 3)
        k = k.reshape(B, S, N_HEADS, HEAD_DIM).transpose(0, 2, 1, 3)
        v = v.reshape(B, S, N_HEADS, HEAD_DIM).transpose(0, 2, 1, 3)
        s = jnp.einsum("bhqd,bhkd->bhqk", q, k, precision=P) / math.sqrt(HEAD_DIM)
        s = jnp.where(mask[None, None], s, -jnp.inf)
        p = jax.nn.softmax(s, axis=-1)
        a = jnp.einsum("bhqk,bhkd->bhqd", p, v, precision=P)
        a = a.transpose(0, 2, 1, 3).reshape(B, S, D_MODEL)
        a = jnp.dot(a, L["wo"], precision=P) + L["bo"]
        x = _ln_ref(x + a, L["g1"], L["be1"])
        h = jnp.maximum(jnp.dot(x, L["w1"], precision=P) + L["b1"], 0.0)
        f = jnp.dot(h, L["w2"], precision=P) + L["b2"]
        x = _ln_ref(x + f, L["g2"], L["be2"])
    return jnp.dot(x, params["w_out"], precision=P) + params["b_out"]


if __name__ == "__main__":
    key = jax.random.PRNGKey(0)
    pkey, tkey = jax.random.split(key)
    params = init_params(pkey)
    slab = prepare_slab(params)

    B, S = 2, 8
    tokens = jax.random.randint(tkey, (B, S), 0, VOCAB, dtype=jnp.int32)

    logits = jax.jit(simple_llm_forward)(tokens, slab)
    jax.block_until_ready(logits)
    assert logits.shape == (B, S, VOCAB), logits.shape
    assert logits.dtype == jnp.float32

    ref = reference_forward(tokens, params)
    np.testing.assert_allclose(np.asarray(logits), np.asarray(ref),
                               rtol=2e-2, atol=2e-3)

    print("KERNEL_OK")
</pallas_src>

<mosaic_0001>
module attributes {stable_mosaic.version = 11 : i64} {
  func.func @fused_llm_kernel(%arg0: memref<16x1xi32, #tpu.memory_space<vmem>>, %arg1: memref<760x128xf32, #tpu.memory_space<vmem>>, %arg2: memref<16x128xf32, #tpu.memory_space<vmem>>) attributes {dimension_semantics = [], scalar_prefetch = 0 : i64, scratch_operands = 0 : i64, tpu.core_type = #tpu.core_type<tc>} {
    %c0 = arith.constant 0 : index
    %c0_0 = arith.constant 0 : index
    %0 = vector.load %arg0[%c0, %c0_0] : memref<16x1xi32, #tpu.memory_space<vmem>>, vector<16x1xi32>
    %1 = tpu.iota {dimensions = array<i32: 1>} : vector<16x128xi32>
    %2 = vector.broadcast %0 : vector<16x1xi32> to vector<16x128xi32>
    %3 = arith.cmpi eq, %1, %2 : vector<16x128xi32>
    %4 = arith.extui %3 : vector<16x128xi1> to vector<16x128xi32>
    %5 = arith.sitofp %4 : vector<16x128xi32> to vector<16x128xf32>
    %c0_1 = arith.constant 0 : index
    %c0_2 = arith.constant 0 : index
    %6 = vector.load %arg1[%c0_1, %c0_2] : memref<760x128xf32, #tpu.memory_space<vmem>>, vector<128x32xf32>
    %cst = arith.constant dense<0.000000e+00> : vector<16x32xf32>
    %7 = tpu.matmul %5, %6, %cst {dimension_numbers = #tpu.dot_dimension_numbers<[1], [0], [0], [1], [0, 0, 1, 1], [], []>} : vector<16x128xf32>, vector<128x32xf32>, vector<16x32xf32> -> vector<16x32xf32>
    %c128 = arith.constant 128 : index
    %c0_3 = arith.constant 0 : index
    %8 = vector.load %arg1[%c128, %c0_3] : memref<760x128xf32, #tpu.memory_space<vmem>>, vector<8x32xf32>
    %9 = tpu.concatenate %8, %8 in 0 : vector<8x32xf32>, vector<8x32xf32> -> vector<16x32xf32>
    %10 = arith.addf %7, %9 : vector<16x32xf32>
    %11 = tpu.iota {dimensions = array<i32: 1>} : vector<2x8x8xi32>
    %12 = tpu.iota {dimensions = array<i32: 2>} : vector<2x8x8xi32>
    %13 = arith.cmpi sle, %12, %11 : vector<2x8x8xi32>
    %cst_4 = arith.constant 0.000000e+00 : f32
    %cst_5 = arith.constant -1.000000e+30 : f32
    %14 = vector.broadcast %cst_4 : f32 to vector<2x8x8xf32>
    %15 = vector.broadcast %cst_5 : f32 to vector<2x8x8xf32>
    %16 = arith.select %13, %14, %15 : vector<2x8x8xi1>, vector<2x8x8xf32>
    %c184 = arith.constant 184 : index
    %c0_6 = arith.constant 0 : index
    %17 = vector.load %arg1[%c184, %c0_6] : memref<760x128xf32, #tpu.memory_space<vmem>>, vector<32x96xf32>
    %cst_7 = arith.constant dense<0.000000e+00> : vector<16x96xf32>
    %18 = tpu.matmul %10, %17, %cst_7 {dimension_numbers = #tpu.dot_dimension_numbers<[1], [0], [0], [1], [0, 0, 1, 1], [], []>} : vector<16x32xf32>, vector<32x96xf32>, vector<16x96xf32> -> vector<16x96xf32>
    %c216 = arith.constant 216 : index
    %c0_8 = arith.constant 0 : index
    %19 = vector.load %arg1[%c216, %c0_8] : memref<760x128xf32, #tpu.memory_space<vmem>>, vector<1x96xf32>
    %20 = vector.broadcast %19 : vector<1x96xf32> to vector<16x96xf32>
    %21 = arith.addf %18, %20 : vector<16x96xf32>
    %22 = vector.shape_cast %21 : vector<16x96xf32> to vector<2x8x96xf32>
    %23 = vector.extract_strided_slice %22 {offsets = [0, 0, 0], sizes = [2, 8, 8], strides = [1, 1, 1]} : vector<2x8x96xf32> to vector<2x8x8xf32>
    %24 = vector.extract_strided_slice %22 {offsets = [0, 0, 32], sizes = [2, 8, 8], strides = [1, 1, 1]} : vector<2x8x96xf32> to vector<2x8x8xf32>
    %25 = vector.extract_strided_slice %22 {offsets = [0, 0, 64], sizes = [2, 8, 8], strides = [1, 1, 1]} : vector<2x8x96xf32> to vector<2x8x8xf32>
    "tpu.trace_start"() <{level = 10 : i32, message = "bqd,bkd->bqk"}> : () -> ()
    %cst_9 = arith.constant dense<0.000000e+00> : vector<2x8x8xf32>
    %26 = tpu.matmul %23, %24, %cst_9 {dimension_numbers = #tpu.dot_dimension_numbers<[2], [2], [1], [1], [0, 0, 0, 1, 1, 1], [0], [0]>} : vector<2x8x8xf32>, vector<2x8x8xf32>, vector<2x8x8xf32> -> vector<2x8x8xf32>
    "tpu.trace_stop"() : () -> ()
    %27 = arith.addf %26, %16 : vector<2x8x8xf32>
    %cst_10 = arith.constant dense<0xFF800000> : vector<2x8xf32>
    %28 = vector.multi_reduction <maximumf>, %27, %cst_10 [2] : vector<2x8x8xf32> to vector<2x8xf32>
    %29 = vector.shape_cast %28 : vector<2x8xf32> to vector<2x8x1xf32>
    %30 = vector.broadcast %29 : vector<2x8x1xf32> to vector<2x8x8xf32>
    %31 = arith.subf %27, %30 : vector<2x8x8xf32>
    %32 = math.exp %31 : vector<2x8x8xf32>
    %cst_11 = arith.constant dense<0.000000e+00> : vector<2x8xf32>
    %33 = vector.multi_reduction <add>, %32, %cst_11 [2] : vector<2x8x8xf32> to vector<2x8xf32>
    %34 = vector.shape_cast %33 : vector<2x8xf32> to vector<2x8x1xf32>
    %35 = tpu.reciprocal %34 {approx = true} : vector<2x8x1xf32> -> vector<2x8x1xf32>
    %36 = vector.broadcast %35 : vector<2x8x1xf32> to vector<2x8x8xf32>
    %37 = arith.mulf %32, %36 : vector<2x8x8xf32>
    "tpu.trace_start"() <{level = 10 : i32, message = "bqk,bkd->bqd"}> : () -> ()
    %cst_12 = arith.constant dense<0.000000e+00> : vector<2x8x8xf32>
    %38 = tpu.matmul %37, %25, %cst_12 {dimension_numbers = #tpu.dot_dimension_numbers<[2], [1], [1], [2], [0, 0, 0, 1, 1, 2], [0], [0]>} : vector<2x8x8xf32>, vector<2x8x8xf32>, vector<2x8x8xf32> -> vector<2x8x8xf32>
    "tpu.trace_stop"() : () -> ()
    %39 = vector.extract_strided_slice %22 {offsets = [0, 0, 8], sizes = [2, 8, 8], strides = [1, 1, 1]} : vector<2x8x96xf32> to vector<2x8x8xf32>
    %40 = vector.extract_strided_slice %22 {offsets = [0, 0, 40], sizes = [2, 8, 8], strides = [1, 1, 1]} : vector<2x8x96xf32> to vector<2x8x8xf32>
    %41 = vector.extract_strided_slice %22 {offsets = [0, 0, 72], sizes = [2, 8, 8], strides = [1, 1, 1]} : vector<2x8x96xf32> to vector<2x8x8xf32>
    "tpu.trace_start"() <{level = 10 : i32, message = "bqd,bkd->bqk"}> : () -> ()
    %cst_13 = arith.constant dense<0.000000e+00> : vector<2x8x8xf32>
    %42 = tpu.matmul %39, %40, %cst_13 {dimension_numbers = #tpu.dot_dimension_numbers<[2], [2], [1], [1], [0, 0, 0, 1, 1, 1], [0], [0]>} : vector<2x8x8xf32>, vector<2x8x8xf32>, vector<2x8x8xf32> -> vector<2x8x8xf32>
    "tpu.trace_stop"() : () -> ()
    %43 = arith.addf %42, %16 : vector<2x8x8xf32>
    %cst_14 = arith.constant dense<0xFF800000> : vector<2x8xf32>
    %44 = vector.multi_reduction <maximumf>, %43, %cst_14 [2] : vector<2x8x8xf32> to vector<2x8xf32>
    %45 = vector.shape_cast %44 : vector<2x8xf32> to vector<2x8x1xf32>
    %46 = vector.broadcast %45 : vector<2x8x1xf32> to vector<2x8x8xf32>
    %47 = arith.subf %43, %46 : vector<2x8x8xf32>
    %48 = math.exp %47 : vector<2x8x8xf32>
    %cst_15 = arith.constant dense<0.000000e+00> : vector<2x8xf32>
    %49 = vector.multi_reduction <add>, %48, %cst_15 [2] : vector<2x8x8xf32> to vector<2x8xf32>
    %50 = vector.shape_cast %49 : vector<2x8xf32> to vector<2x8x1xf32>
    %51 = tpu.reciprocal %50 {approx = true} : vector<2x8x1xf32> -> vector<2x8x1xf32>
    %52 = vector.broadcast %51 : vector<2x8x1xf32> to vector<2x8x8xf32>
    %53 = arith.mulf %48, %52 : vector<2x8x8xf32>
    "tpu.trace_start"() <{level = 10 : i32, message = "bqk,bkd->bqd"}> : () -> ()
    %cst_16 = arith.constant dense<0.000000e+00> : vector<2x8x8xf32>
    %54 = tpu.matmul %53, %41, %cst_16 {dimension_numbers = #tpu.dot_dimension_numbers<[2], [1], [1], [2], [0, 0, 0, 1, 1, 2], [0], [0]>} : vector<2x8x8xf32>, vector<2x8x8xf32>, vector<2x8x8xf32> -> vector<2x8x8xf32>
    "tpu.trace_stop"() : () -> ()
    %55 = vector.extract_strided_slice %22 {offsets = [0, 0, 16], sizes = [2, 8, 8], strides = [1, 1, 1]} : vector<2x8x96xf32> to vector<2x8x8xf32>
    %56 = vector.extract_strided_slice %22 {offsets = [0, 0, 48], sizes = [2, 8, 8], strides = [1, 1, 1]} : vector<2x8x96xf32> to vector<2x8x8xf32>
    %57 = vector.extract_strided_slice %22 {offsets = [0, 0, 80], sizes = [2, 8, 8], strides = [1, 1, 1]} : vector<2x8x96xf32> to vector<2x8x8xf32>
    "tpu.trace_start"() <{level = 10 : i32, message = "bqd,bkd->bqk"}> : () -> ()
    %cst_17 = arith.constant dense<0.000000e+00> : vector<2x8x8xf32>
    %58 = tpu.matmul %55, %56, %cst_17 {dimension_numbers = #tpu.dot_dimension_numbers<[2], [2], [1], [1], [0, 0, 0, 1, 1, 1], [0], [0]>} : vector<2x8x8xf32>, vector<2x8x8xf32>, vector<2x8x8xf32> -> vector<2x8x8xf32>
    "tpu.trace_stop"() : () -> ()
    %59 = arith.addf %58, %16 : vector<2x8x8xf32>
    %cst_18 = arith.constant dense<0xFF800000> : vector<2x8xf32>
    %60 = vector.multi_reduction <maximumf>, %59, %cst_18 [2] : vector<2x8x8xf32> to vector<2x8xf32>
    %61 = vector.shape_cast %60 : vector<2x8xf32> to vector<2x8x1xf32>
    %62 = vector.broadcast %61 : vector<2x8x1xf32> to vector<2x8x8xf32>
    %63 = arith.subf %59, %62 : vector<2x8x8xf32>
    %64 = math.exp %63 : vector<2x8x8xf32>
    %cst_19 = arith.constant dense<0.000000e+00> : vector<2x8xf32>
    %65 = vector.multi_reduction <add>, %64, %cst_19 [2] : vector<2x8x8xf32> to vector<2x8xf32>
    %66 = vector.shape_cast %65 : vector<2x8xf32> to vector<2x8x1xf32>
    %67 = tpu.reciprocal %66 {approx = true} : vector<2x8x1xf32> -> vector<2x8x1xf32>
    %68 = vector.broadcast %67 : vector<2x8x1xf32> to vector<2x8x8xf32>
    %69 = arith.mulf %64, %68 : vector<2x8x8xf32>
    "tpu.trace_start"() <{level = 10 : i32, message = "bqk,bkd->bqd"}> : () -> ()
    %cst_20 = arith.constant dense<0.000000e+00> : vector<2x8x8xf32>
    %70 = tpu.matmul %69, %57, %cst_20 {dimension_numbers = #tpu.dot_dimension_numbers<[2], [1], [1], [2], [0, 0, 0, 1, 1, 2], [0], [0]>} : vector<2x8x8xf32>, vector<2x8x8xf32>, vector<2x8x8xf32> -> vector<2x8x8xf32>
    "tpu.trace_stop"() : () -> ()
    %71 = vector.extract_strided_slice %22 {offsets = [0, 0, 24], sizes = [2, 8, 8], strides = [1, 1, 1]} : vector<2x8x96xf32> to vector<2x8x8xf32>
    %72 = vector.extract_strided_slice %22 {offsets = [0, 0, 56], sizes = [2, 8, 8], strides = [1, 1, 1]} : vector<2x8x96xf32> to vector<2x8x8xf32>
    %73 = vector.extract_strided_slice %22 {offsets = [0, 0, 88], sizes = [2, 8, 8], strides = [1, 1, 1]} : vector<2x8x96xf32> to vector<2x8x8xf32>
    "tpu.trace_start"() <{level = 10 : i32, message = "bqd,bkd->bqk"}> : () -> ()
    %cst_21 = arith.constant dense<0.000000e+00> : vector<2x8x8xf32>
    %74 = tpu.matmul %71, %72, %cst_21 {dimension_numbers = #tpu.dot_dimension_numbers<[2], [2], [1], [1], [0, 0, 0, 1, 1, 1], [0], [0]>} : vector<2x8x8xf32>, vector<2x8x8xf32>, vector<2x8x8xf32> -> vector<2x8x8xf32>
    "tpu.trace_stop"() : () -> ()
    %75 = arith.addf %74, %16 : vector<2x8x8xf32>
    %cst_22 = arith.constant dense<0xFF800000> : vector<2x8xf32>
    %76 = vector.multi_reduction <maximumf>, %75, %cst_22 [2] : vector<2x8x8xf32> to vector<2x8xf32>
    %77 = vector.shape_cast %76 : vector<2x8xf32> to vector<2x8x1xf32>
    %78 = vector.broadcast %77 : vector<2x8x1xf32> to vector<2x8x8xf32>
    %79 = arith.subf %75, %78 : vector<2x8x8xf32>
    %80 = math.exp %79 : vector<2x8x8xf32>
    %cst_23 = arith.constant dense<0.000000e+00> : vector<2x8xf32>
    %81 = vector.multi_reduction <add>, %80, %cst_23 [2] : vector<2x8x8xf32> to vector<2x8xf32>
    %82 = vector.shape_cast %81 : vector<2x8xf32> to vector<2x8x1xf32>
    %83 = tpu.reciprocal %82 {approx = true} : vector<2x8x1xf32> -> vector<2x8x1xf32>
    %84 = vector.broadcast %83 : vector<2x8x1xf32> to vector<2x8x8xf32>
    %85 = arith.mulf %80, %84 : vector<2x8x8xf32>
    "tpu.trace_start"() <{level = 10 : i32, message = "bqk,bkd->bqd"}> : () -> ()
    %cst_24 = arith.constant dense<0.000000e+00> : vector<2x8x8xf32>
    %86 = tpu.matmul %85, %73, %cst_24 {dimension_numbers = #tpu.dot_dimension_numbers<[2], [1], [1], [2], [0, 0, 0, 1, 1, 2], [0], [0]>} : vector<2x8x8xf32>, vector<2x8x8xf32>, vector<2x8x8xf32> -> vector<2x8x8xf32>
    "tpu.trace_stop"() : () -> ()
    %87 = tpu.concatenate %38, %54, %70, %86 in 2 : vector<2x8x8xf32>, vector<2x8x8xf32>, vector<2x8x8xf32>, vector<2x8x8xf32> -> vector<2x8x32xf32>
    %88 = vector.shape_cast %87 : vector<2x8x32xf32> to vector<16x32xf32>
    %c224 = arith.constant 224 : index
    %c0_25 = arith.constant 0 : index
    %89 = vector.load %arg1[%c224, %c0_25] : memref<760x128xf32, #tpu.memory_space<vmem>>, vector<32x32xf32>
    %cst_26 = arith.constant dense<0.000000e+00> : vector<16x32xf32>
    %90 = tpu.matmul %88, %89, %cst_26 {dimension_numbers = #tpu.dot_dimension_numbers<[1], [0], [0], [1], [0, 0, 1, 1], [], []>} : vector<16x32xf32>, vector<32x32xf32>, vector<16x32xf32> -> vector<16x32xf32>
    %c256 = arith.constant 256 : index
    %c0_27 = arith.constant 0 : index
    %91 = vector.load %arg1[%c256, %c0_27] : memref<760x128xf32, #tpu.memory_space<vmem>>, vector<1x32xf32>
    %92 = vector.broadcast %91 : vector<1x32xf32> to vector<16x32xf32>
    %93 = arith.addf %90, %92 : vector<16x32xf32>
    %94 = arith.addf %10, %93 : vector<16x32xf32>
    %c264 = arith.constant 264 : index
    %c0_28 = arith.constant 0 : index
    %95 = vector.load %arg1[%c264, %c0_28] : memref<760x128xf32, #tpu.memory_space<vmem>>, vector<1x32xf32>
    %c272 = arith.constant 272 : index
    %c0_29 = arith.constant 0 : index
    %96 = vector.load %arg1[%c272, %c0_29] : memref<760x128xf32, #tpu.memory_space<vmem>>, vector<1x32xf32>
    %cst_30 = arith.constant dense<0.000000e+00> : vector<16xf32>
    %97 = vector.multi_reduction <add>, %94, %cst_30 [1] : vector<16x32xf32> to vector<16xf32>
    %98 = vector.shape_cast %97 : vector<16xf32> to vector<16x1xf32>
    %cst_31 = arith.constant 3.200000e+01 : f32
    %99 = vector.broadcast %cst_31 : f32 to vector<16x1xf32>
    %100 = arith.divf %98, %99 : vector<16x1xf32>
    %101 = vector.broadcast %100 : vector<16x1xf32> to vector<16x32xf32>
    %102 = arith.subf %94, %101 : vector<16x32xf32>
    %103 = arith.mulf %102, %102 : vector<16x32xf32>
    %cst_32 = arith.constant dense<0.000000e+00> : vector<16xf32>
    %104 = vector.multi_reduction <add>, %103, %cst_32 [1] : vector<16x32xf32> to vector<16xf32>
    %105 = vector.shape_cast %104 : vector<16xf32> to vector<16x1xf32>
    %cst_33 = arith.constant 3.200000e+01 : f32
    %106 = vector.broadcast %cst_33 : f32 to vector<16x1xf32>
    %107 = arith.divf %105, %106 : vector<16x1xf32>
    %108 = vector.broadcast %100 : vector<16x1xf32> to vector<16x32xf32>
    %109 = arith.subf %94, %108 : vector<16x32xf32>
    %cst_34 = arith.constant 9.99999974E-6 : f32
    %110 = vector.broadcast %cst_34 : f32 to vector<16x1xf32>
    %111 = arith.addf %107, %110 : vector<16x1xf32>
    %112 = math.rsqrt %111 : vector<16x1xf32>
    %113 = vector.broadcast %112 : vector<16x1xf32> to vector<16x32xf32>
    %114 = arith.mulf %109, %113 : vector<16x32xf32>
    %115 = vector.broadcast %95 : vector<1x32xf32> to vector<16x32xf32>
    %116 = arith.mulf %114, %115 : vector<16x32xf32>
    %117 = vector.broadcast %96 : vector<1x32xf32> to vector<16x32xf32>
    %118 = arith.addf %116, %117 : vector<16x32xf32>
    %c280 = arith.constant 280 : index
    %c0_35 = arith.constant 0 : index
    %119 = vector.load %arg1[%c280, %c0_35] : memref<760x128xf32, #tpu.memory_space<vmem>>, vector<32x128xf32>
    %cst_36 = arith.constant dense<0.000000e+00> : vector<16x128xf32>
    %120 = tpu.matmul %118, %119, %cst_36 {dimension_numbers = #tpu.dot_dimension_numbers<[1], [0], [0], [1], [0, 0, 1, 1], [], []>} : vector<16x32xf32>, vector<32x128xf32>, vector<16x128xf32> -> vector<16x128xf32>
    %c312 = arith.constant 312 : index
    %c0_37 = arith.constant 0 : index
    %121 = vector.load %arg1[%c312, %c0_37] : memref<760x128xf32, #tpu.memory_space<vmem>>, vector<1x128xf32>
    %122 = vector.broadcast %121 : vector<1x128xf32> to vector<16x128xf32>
    %123 = arith.addf %120, %122 : vector<16x128xf32>
    %cst_38 = arith.constant 0.000000e+00 : f32
    %124 = vector.broadcast %cst_38 : f32 to vector<16x128xf32>
    %125 = arith.maximumf %123, %124 : vector<16x128xf32>
    %c320 = arith.constant 320 : index
    %c0_39 = arith.constant 0 : index
    %126 = vector.load %arg1[%c320, %c0_39] : memref<760x128xf32, #tpu.memory_space<vmem>>, vector<128x32xf32>
    %cst_40 = arith.constant dense<0.000000e+00> : vector<16x32xf32>
    %127 = tpu.matmul %125, %126, %cst_40 {dimension_numbers = #tpu.dot_dimension_numbers<[1], [0], [0], [1], [0, 0, 1, 1], [], []>} : vector<16x128xf32>, vector<128x32xf32>, vector<16x32xf32> -> vector<16x32xf32>
    %c448 = arith.constant 448 : index
    %c0_41 = arith.constant 0 : index
    %128 = vector.load %arg1[%c448, %c0_41] : memref<760x128xf32, #tpu.memory_space<vmem>>, vector<1x32xf32>
    %129 = vector.broadcast %128 : vector<1x32xf32> to vector<16x32xf32>
    %130 = arith.addf %127, %129 : vector<16x32xf32>
    %131 = arith.addf %118, %130 : vector<16x32xf32>
    %c456 = arith.constant 456 : index
    %c0_42 = arith.constant 0 : index
    %132 = vector.load %arg1[%c456, %c0_42] : memref<760x128xf32, #tpu.memory_space<vmem>>, vector<1x32xf32>
    %c464 = arith.constant 464 : index
    %c0_43 = arith.constant 0 : index
    %133 = vector.load %arg1[%c464, %c0_43] : memref<760x128xf32, #tpu.memory_space<vmem>>, vector<1x32xf32>
    %cst_44 = arith.constant dense<0.000000e+00> : vector<16xf32>
    %134 = vector.multi_reduction <add>, %131, %cst_44 [1] : vector<16x32xf32> to vector<16xf32>
    %135 = vector.shape_cast %134 : vector<16xf32> to vector<16x1xf32>
    %cst_45 = arith.constant 3.200000e+01 : f32
    %136 = vector.broadcast %cst_45 : f32 to vector<16x1xf32>
    %137 = arith.divf %135, %136 : vector<16x1xf32>
    %138 = vector.broadcast %137 : vector<16x1xf32> to vector<16x32xf32>
    %139 = arith.subf %131, %138 : vector<16x32xf32>
    %140 = arith.mulf %139, %139 : vector<16x32xf32>
    %cst_46 = arith.constant dense<0.000000e+00> : vector<16xf32>
    %141 = vector.multi_reduction <add>, %140, %cst_46 [1] : vector<16x32xf32> to vector<16xf32>
    %142 = vector.shape_cast %141 : vector<16xf32> to vector<16x1xf32>
    %cst_47 = arith.constant 3.200000e+01 : f32
    %143 = vector.broadcast %cst_47 : f32 to vector<16x1xf32>
    %144 = arith.divf %142, %143 : vector<16x1xf32>
    %145 = vector.broadcast %137 : vector<16x1xf32> to vector<16x32xf32>
    %146 = arith.subf %131, %145 : vector<16x32xf32>
    %cst_48 = arith.constant 9.99999974E-6 : f32
    %147 = vector.broadcast %cst_48 : f32 to vector<16x1xf32>
    %148 = arith.addf %144, %147 : vector<16x1xf32>
    %149 = math.rsqrt %148 : vector<16x1xf32>
    %150 = vector.broadcast %149 : vector<16x1xf32> to vector<16x32xf32>
    %151 = arith.mulf %146, %150 : vector<16x32xf32>
    %152 = vector.broadcast %132 : vector<1x32xf32> to vector<16x32xf32>
    %153 = arith.mulf %151, %152 : vector<16x32xf32>
    %154 = vector.broadcast %133 : vector<1x32xf32> to vector<16x32xf32>
    %155 = arith.addf %153, %154 : vector<16x32xf32>
    %c472 = arith.constant 472 : index
    %c0_49 = arith.constant 0 : index
    %156 = vector.load %arg1[%c472, %c0_49] : memref<760x128xf32, #tpu.memory_space<vmem>>, vector<32x96xf32>
    %cst_50 = arith.constant dense<0.000000e+00> : vector<16x96xf32>
    %157 = tpu.matmul %155, %156, %cst_50 {dimension_numbers = #tpu.dot_dimension_numbers<[1], [0], [0], [1], [0, 0, 1, 1], [], []>} : vector<16x32xf32>, vector<32x96xf32>, vector<16x96xf32> -> vector<16x96xf32>
    %c504 = arith.constant 504 : index
    %c0_51 = arith.constant 0 : index
    %158 = vector.load %arg1[%c504, %c0_51] : memref<760x128xf32, #tpu.memory_space<vmem>>, vector<1x96xf32>
    %159 = vector.broadcast %158 : vector<1x96xf32> to vector<16x96xf32>
    %160 = arith.addf %157, %159 : vector<16x96xf32>
    %161 = vector.shape_cast %160 : vector<16x96xf32> to vector<2x8x96xf32>
    %162 = vector.extract_strided_slice %161 {offsets = [0, 0, 0], sizes = [2, 8, 8], strides = [1, 1, 1]} : vector<2x8x96xf32> to vector<2x8x8xf32>
    %163 = vector.extract_strided_slice %161 {offsets = [0, 0, 32], sizes = [2, 8, 8], strides = [1, 1, 1]} : vector<2x8x96xf32> to vector<2x8x8xf32>
    %164 = vector.extract_strided_slice %161 {offsets = [0, 0, 64], sizes = [2, 8, 8], strides = [1, 1, 1]} : vector<2x8x96xf32> to vector<2x8x8xf32>
    "tpu.trace_start"() <{level = 10 : i32, message = "bqd,bkd->bqk"}> : () -> ()
    %cst_52 = arith.constant dense<0.000000e+00> : vector<2x8x8xf32>
    %165 = tpu.matmul %162, %163, %cst_52 {dimension_numbers = #tpu.dot_dimension_numbers<[2], [2], [1], [1], [0, 0, 0, 1, 1, 1], [0], [0]>} : vector<2x8x8xf32>, vector<2x8x8xf32>, vector<2x8x8xf32> -> vector<2x8x8xf32>
    "tpu.trace_stop"() : () -> ()
    %166 = arith.addf %165, %16 : vector<2x8x8xf32>
    %cst_53 = arith.constant dense<0xFF800000> : vector<2x8xf32>
    %167 = vector.multi_reduction <maximumf>, %166, %cst_53 [2] : vector<2x8x8xf32> to vector<2x8xf32>
    %168 = vector.shape_cast %167 : vector<2x8xf32> to vector<2x8x1xf32>
    %169 = vector.broadcast %168 : vector<2x8x1xf32> to vector<2x8x8xf32>
    %170 = arith.subf %166, %169 : vector<2x8x8xf32>
    %171 = math.exp %170 : vector<2x8x8xf32>
    %cst_54 = arith.constant dense<0.000000e+00> : vector<2x8xf32>
    %172 = vector.multi_reduction <add>, %171, %cst_54 [2] : vector<2x8x8xf32> to vector<2x8xf32>
    %173 = vector.shape_cast %172 : vector<2x8xf32> to vector<2x8x1xf32>
    %174 = tpu.reciprocal %173 {approx = true} : vector<2x8x1xf32> -> vector<2x8x1xf32>
    %175 = vector.broadcast %174 : vector<2x8x1xf32> to vector<2x8x8xf32>
    %176 = arith.mulf %171, %175 : vector<2x8x8xf32>
    "tpu.trace_start"() <{level = 10 : i32, message = "bqk,bkd->bqd"}> : () -> ()
    %cst_55 = arith.constant dense<0.000000e+00> : vector<2x8x8xf32>
    %177 = tpu.matmul %176, %164, %cst_55 {dimension_numbers = #tpu.dot_dimension_numbers<[2], [1], [1], [2], [0, 0, 0, 1, 1, 2], [0], [0]>} : vector<2x8x8xf32>, vector<2x8x8xf32>, vector<2x8x8xf32> -> vector<2x8x8xf32>
    "tpu.trace_stop"() : () -> ()
    %178 = vector.extract_strided_slice %161 {offsets = [0, 0, 8], sizes = [2, 8, 8], strides = [1, 1, 1]} : vector<2x8x96xf32> to vector<2x8x8xf32>
    %179 = vector.extract_strided_slice %161 {offsets = [0, 0, 40], sizes = [2, 8, 8], strides = [1, 1, 1]} : vector<2x8x96xf32> to vector<2x8x8xf32>
    %180 = vector.extract_strided_slice %161 {offsets = [0, 0, 72], sizes = [2, 8, 8], strides = [1, 1, 1]} : vector<2x8x96xf32> to vector<2x8x8xf32>
    "tpu.trace_start"() <{level = 10 : i32, message = "bqd,bkd->bqk"}> : () -> ()
    %cst_56 = arith.constant dense<0.000000e+00> : vector<2x8x8xf32>
    %181 = tpu.matmul %178, %179, %cst_56 {dimension_numbers = #tpu.dot_dimension_numbers<[2], [2], [1], [1], [0, 0, 0, 1, 1, 1], [0], [0]>} : vector<2x8x8xf32>, vector<2x8x8xf32>, vector<2x8x8xf32> -> vector<2x8x8xf32>
    "tpu.trace_stop"() : () -> ()
    %182 = arith.addf %181, %16 : vector<2x8x8xf32>
    %cst_57 = arith.constant dense<0xFF800000> : vector<2x8xf32>
    %183 = vector.multi_reduction <maximumf>, %182, %cst_57 [2] : vector<2x8x8xf32> to vector<2x8xf32>
    %184 = vector.shape_cast %183 : vector<2x8xf32> to vector<2x8x1xf32>
    %185 = vector.broadcast %184 : vector<2x8x1xf32> to vector<2x8x8xf32>
    %186 = arith.subf %182, %185 : vector<2x8x8xf32>
    %187 = math.exp %186 : vector<2x8x8xf32>
    %cst_58 = arith.constant dense<0.000000e+00> : vector<2x8xf32>
    %188 = vector.multi_reduction <add>, %187, %cst_58 [2] : vector<2x8x8xf32> to vector<2x8xf32>
    %189 = vector.shape_cast %188 : vector<2x8xf32> to vector<2x8x1xf32>
    %190 = tpu.reciprocal %189 {approx = true} : vector<2x8x1xf32> -> vector<2x8x1xf32>
    %191 = vector.broadcast %190 : vector<2x8x1xf32> to vector<2x8x8xf32>
    %192 = arith.mulf %187, %191 : vector<2x8x8xf32>
    "tpu.trace_start"() <{level = 10 : i32, message = "bqk,bkd->bqd"}> : () -> ()
    %cst_59 = arith.constant dense<0.000000e+00> : vector<2x8x8xf32>
    %193 = tpu.matmul %192, %180, %cst_59 {dimension_numbers = #tpu.dot_dimension_numbers<[2], [1], [1], [2], [0, 0, 0, 1, 1, 2], [0], [0]>} : vector<2x8x8xf32>, vector<2x8x8xf32>, vector<2x8x8xf32> -> vector<2x8x8xf32>
    "tpu.trace_stop"() : () -> ()
    %194 = vector.extract_strided_slice %161 {offsets = [0, 0, 16], sizes = [2, 8, 8], strides = [1, 1, 1]} : vector<2x8x96xf32> to vector<2x8x8xf32>
    %195 = vector.extract_strided_slice %161 {offsets = [0, 0, 48], sizes = [2, 8, 8], strides = [1, 1, 1]} : vector<2x8x96xf32> to vector<2x8x8xf32>
    %196 = vector.extract_strided_slice %161 {offsets = [0, 0, 80], sizes = [2, 8, 8], strides = [1, 1, 1]} : vector<2x8x96xf32> to vector<2x8x8xf32>
    "tpu.trace_start"() <{level = 10 : i32, message = "bqd,bkd->bqk"}> : () -> ()
    %cst_60 = arith.constant dense<0.000000e+00> : vector<2x8x8xf32>
    %197 = tpu.matmul %194, %195, %cst_60 {dimension_numbers = #tpu.dot_dimension_numbers<[2], [2], [1], [1], [0, 0, 0, 1, 1, 1], [0], [0]>} : vector<2x8x8xf32>, vector<2x8x8xf32>, vector<2x8x8xf32> -> vector<2x8x8xf32>
    "tpu.trace_stop"() : () -> ()
    %198 = arith.addf %197, %16 : vector<2x8x8xf32>
    %cst_61 = arith.constant dense<0xFF800000> : vector<2x8xf32>
    %199 = vector.multi_reduction <maximumf>, %198, %cst_61 [2] : vector<2x8x8xf32> to vector<2x8xf32>
    %200 = vector.shape_cast %199 : vector<2x8xf32> to vector<2x8x1xf32>
    %201 = vector.broadcast %200 : vector<2x8x1xf32> to vector<2x8x8xf32>
    %202 = arith.subf %198, %201 : vector<2x8x8xf32>
    %203 = math.exp %202 : vector<2x8x8xf32>
    %cst_62 = arith.constant dense<0.000000e+00> : vector<2x8xf32>
    %204 = vector.multi_reduction <add>, %203, %cst_62 [2] : vector<2x8x8xf32> to vector<2x8xf32>
    %205 = vector.shape_cast %204 : vector<2x8xf32> to vector<2x8x1xf32>
    %206 = tpu.reciprocal %205 {approx = true} : vector<2x8x1xf32> -> vector<2x8x1xf32>
    %207 = vector.broadcast %206 : vector<2x8x1xf32> to vector<2x8x8xf32>
    %208 = arith.mulf %203, %207 : vector<2x8x8xf32>
    "tpu.trace_start"() <{level = 10 : i32, message = "bqk,bkd->bqd"}> : () -> ()
    %cst_63 = arith.constant dense<0.000000e+00> : vector<2x8x8xf32>
    %209 = tpu.matmul %208, %196, %cst_63 {dimension_numbers = #tpu.dot_dimension_numbers<[2], [1], [1], [2], [0, 0, 0, 1, 1, 2], [0], [0]>} : vector<2x8x8xf32>, vector<2x8x8xf32>, vector<2x8x8xf32> -> vector<2x8x8xf32>
    "tpu.trace_stop"() : () -> ()
    %210 = vector.extract_strided_slice %161 {offsets = [0, 0, 24], sizes = [2, 8, 8], strides = [1, 1, 1]} : vector<2x8x96xf32> to vector<2x8x8xf32>
    %211 = vector.extract_strided_slice %161 {offsets = [0, 0, 56], sizes = [2, 8, 8], strides = [1, 1, 1]} : vector<2x8x96xf32> to vector<2x8x8xf32>
    %212 = vector.extract_strided_slice %161 {offsets = [0, 0, 88], sizes = [2, 8, 8], strides = [1, 1, 1]} : vector<2x8x96xf32> to vector<2x8x8xf32>
    "tpu.trace_start"() <{level = 10 : i32, message = "bqd,bkd->bqk"}> : () -> ()
    %cst_64 = arith.constant dense<0.000000e+00> : vector<2x8x8xf32>
    %213 = tpu.matmul %210, %211, %cst_64 {dimension_numbers = #tpu.dot_dimension_numbers<[2], [2], [1], [1], [0, 0, 0, 1, 1, 1], [0], [0]>} : vector<2x8x8xf32>, vector<2x8x8xf32>, vector<2x8x8xf32> -> vector<2x8x8xf32>
    "tpu.trace_stop"() : () -> ()
    %214 = arith.addf %213, %16 : vector<2x8x8xf32>
    %cst_65 = arith.constant dense<0xFF800000> : vector<2x8xf32>
    %215 = vector.multi_reduction <maximumf>, %214, %cst_65 [2] : vector<2x8x8xf32> to vector<2x8xf32>
    %216 = vector.shape_cast %215 : vector<2x8xf32> to vector<2x8x1xf32>
    %217 = vector.broadcast %216 : vector<2x8x1xf32> to vector<2x8x8xf32>
    %218 = arith.subf %214, %217 : vector<2x8x8xf32>
    %219 = math.exp %218 : vector<2x8x8xf32>
    %cst_66 = arith.constant dense<0.000000e+00> : vector<2x8xf32>
    %220 = vector.multi_reduction <add>, %219, %cst_66 [2] : vector<2x8x8xf32> to vector<2x8xf32>
    %221 = vector.shape_cast %220 : vector<2x8xf32> to vector<2x8x1xf32>
    %222 = tpu.reciprocal %221 {approx = true} : vector<2x8x1xf32> -> vector<2x8x1xf32>
    %223 = vector.broadcast %222 : vector<2x8x1xf32> to vector<2x8x8xf32>
    %224 = arith.mulf %219, %223 : vector<2x8x8xf32>
    "tpu.trace_start"() <{level = 10 : i32, message = "bqk,bkd->bqd"}> : () -> ()
    %cst_67 = arith.constant dense<0.000000e+00> : vector<2x8x8xf32>
    %225 = tpu.matmul %224, %212, %cst_67 {dimension_numbers = #tpu.dot_dimension_numbers<[2], [1], [1], [2], [0, 0, 0, 1, 1, 2], [0], [0]>} : vector<2x8x8xf32>, vector<2x8x8xf32>, vector<2x8x8xf32> -> vector<2x8x8xf32>
    "tpu.trace_stop"() : () -> ()
    %226 = tpu.concatenate %177, %193, %209, %225 in 2 : vector<2x8x8xf32>, vector<2x8x8xf32>, vector<2x8x8xf32>, vector<2x8x8xf32> -> vector<2x8x32xf32>
    %227 = vector.shape_cast %226 : vector<2x8x32xf32> to vector<16x32xf32>
    %c512 = arith.constant 512 : index
    %c0_68 = arith.constant 0 : index
    %228 = vector.load %arg1[%c512, %c0_68] : memref<760x128xf32, #tpu.memory_space<vmem>>, vector<32x32xf32>
    %cst_69 = arith.constant dense<0.000000e+00> : vector<16x32xf32>
    %229 = tpu.matmul %227, %228, %cst_69 {dimension_numbers = #tpu.dot_dimension_numbers<[1], [0], [0], [1], [0, 0, 1, 1], [], []>} : vector<16x32xf32>, vector<32x32xf32>, vector<16x32xf32> -> vector<16x32xf32>
    %c544 = arith.constant 544 : index
    %c0_70 = arith.constant 0 : index
    %230 = vector.load %arg1[%c544, %c0_70] : memref<760x128xf32, #tpu.memory_space<vmem>>, vector<1x32xf32>
    %231 = vector.broadcast %230 : vector<1x32xf32> to vector<16x32xf32>
    %232 = arith.addf %229, %231 : vector<16x32xf32>
    %233 = arith.addf %155, %232 : vector<16x32xf32>
    %c552 = arith.constant 552 : index
    %c0_71 = arith.constant 0 : index
    %234 = vector.load %arg1[%c552, %c0_71] : memref<760x128xf32, #tpu.memory_space<vmem>>, vector<1x32xf32>
    %c560 = arith.constant 560 : index
    %c0_72 = arith.constant 0 : index
    %235 = vector.load %arg1[%c560, %c0_72] : memref<760x128xf32, #tpu.memory_space<vmem>>, vector<1x32xf32>
    %cst_73 = arith.constant dense<0.000000e+00> : vector<16xf32>
    %236 = vector.multi_reduction <add>, %233, %cst_73 [1] : vector<16x32xf32> to vector<16xf32>
    %237 = vector.shape_cast %236 : vector<16xf32> to vector<16x1xf32>
    %cst_74 = arith.constant 3.200000e+01 : f32
    %238 = vector.broadcast %cst_74 : f32 to vector<16x1xf32>
    %239 = arith.divf %237, %238 : vector<16x1xf32>
    %240 = vector.broadcast %239 : vector<16x1xf32> to vector<16x32xf32>
    %241 = arith.subf %233, %240 : vector<16x32xf32>
    %242 = arith.mulf %241, %241 : vector<16x32xf32>
    %cst_75 = arith.constant dense<0.000000e+00> : vector<16xf32>
    %243 = vector.multi_reduction <add>, %242, %cst_75 [1] : vector<16x32xf32> to vector<16xf32>
    %244 = vector.shape_cast %243 : vector<16xf32> to vector<16x1xf32>
    %cst_76 = arith.constant 3.200000e+01 : f32
    %245 = vector.broadcast %cst_76 : f32 to vector<16x1xf32>
    %246 = arith.divf %244, %245 : vector<16x1xf32>
    %247 = vector.broadcast %239 : vector<16x1xf32> to vector<16x32xf32>
    %248 = arith.subf %233, %247 : vector<16x32xf32>
    %cst_77 = arith.constant 9.99999974E-6 : f32
    %249 = vector.broadcast %cst_77 : f32 to vector<16x1xf32>
    %250 = arith.addf %246, %249 : vector<16x1xf32>
    %251 = math.rsqrt %250 : vector<16x1xf32>
    %252 = vector.broadcast %251 : vector<16x1xf32> to vector<16x32xf32>
    %253 = arith.mulf %248, %252 : vector<16x32xf32>
    %254 = vector.broadcast %234 : vector<1x32xf32> to vector<16x32xf32>
    %255 = arith.mulf %253, %254 : vector<16x32xf32>
    %256 = vector.broadcast %235 : vector<1x32xf32> to vector<16x32xf32>
    %257 = arith.addf %255, %256 : vector<16x32xf32>
    %c568 = arith.constant 568 : index
    %c0_78 = arith.constant 0 : index
    %258 = vector.load %arg1[%c568, %c0_78] : memref<760x128xf32, #tpu.memory_space<vmem>>, vector<32x128xf32>
    %cst_79 = arith.constant dense<0.000000e+00> : vector<16x128xf32>
    %259 = tpu.matmul %257, %258, %cst_79 {dimension_numbers = #tpu.dot_dimension_numbers<[1], [0], [0], [1], [0, 0, 1, 1], [], []>} : vector<16x32xf32>, vector<32x128xf32>, vector<16x128xf32> -> vector<16x128xf32>
    %c600 = arith.constant 600 : index
    %c0_80 = arith.constant 0 : index
    %260 = vector.load %arg1[%c600, %c0_80] : memref<760x128xf32, #tpu.memory_space<vmem>>, vector<1x128xf32>
    %261 = vector.broadcast %260 : vector<1x128xf32> to vector<16x128xf32>
    %262 = arith.addf %259, %261 : vector<16x128xf32>
    %cst_81 = arith.constant 0.000000e+00 : f32
    %263 = vector.broadcast %cst_81 : f32 to vector<16x128xf32>
    %264 = arith.maximumf %262, %263 : vector<16x128xf32>
    %c608 = arith.constant 608 : index
    %c0_82 = arith.constant 0 : index
    %265 = vector.load %arg1[%c608, %c0_82] : memref<760x128xf32, #tpu.memory_space<vmem>>, vector<128x32xf32>
    %cst_83 = arith.constant dense<0.000000e+00> : vector<16x32xf32>
    %266 = tpu.matmul %264, %265, %cst_83 {dimension_numbers = #tpu.dot_dimension_numbers<[1], [0], [0], [1], [0, 0, 1, 1], [], []>} : vector<16x128xf32>, vector<128x32xf32>, vector<16x32xf32> -> vector<16x32xf32>
    %c736 = arith.constant 736 : index
    %c0_84 = arith.constant 0 : index
    %267 = vector.load %arg1[%c736, %c0_84] : memref<760x128xf32, #tpu.memory_space<vmem>>, vector<1x32xf32>
    %268 = vector.broadcast %267 : vector<1x32xf32> to vector<16x32xf32>
    %269 = arith.addf %266, %268 : vector<16x32xf32>
    %270 = arith.addf %257, %269 : vector<16x32xf32>
    %c744 = arith.constant 744 : index
    %c0_85 = arith.constant 0 : index
    %271 = vector.load %arg1[%c744, %c0_85] : memref<760x128xf32, #tpu.memory_space<vmem>>, vector<1x32xf32>
    %c752 = arith.constant 752 : index
    %c0_86 = arith.constant 0 : index
    %272 = vector.load %arg1[%c752, %c0_86] : memref<760x128xf32, #tpu.memory_space<vmem>>, vector<1x32xf32>
    %cst_87 = arith.constant dense<0.000000e+00> : vector<16xf32>
    %273 = vector.multi_reduction <add>, %270, %cst_87 [1] : vector<16x32xf32> to vector<16xf32>
    %274 = vector.shape_cast %273 : vector<16xf32> to vector<16x1xf32>
    %cst_88 = arith.constant 3.200000e+01 : f32
    %275 = vector.broadcast %cst_88 : f32 to vector<16x1xf32>
    %276 = arith.divf %274, %275 : vector<16x1xf32>
    %277 = vector.broadcast %276 : vector<16x1xf32> to vector<16x32xf32>
    %278 = arith.subf %270, %277 : vector<16x32xf32>
    %279 = arith.mulf %278, %278 : vector<16x32xf32>
    %cst_89 = arith.constant dense<0.000000e+00> : vector<16xf32>
    %280 = vector.multi_reduction <add>, %279, %cst_89 [1] : vector<16x32xf32> to vector<16xf32>
    %281 = vector.shape_cast %280 : vector<16xf32> to vector<16x1xf32>
    %cst_90 = arith.constant 3.200000e+01 : f32
    %282 = vector.broadcast %cst_90 : f32 to vector<16x1xf32>
    %283 = arith.divf %281, %282 : vector<16x1xf32>
    %284 = vector.broadcast %276 : vector<16x1xf32> to vector<16x32xf32>
    %285 = arith.subf %270, %284 : vector<16x32xf32>
    %cst_91 = arith.constant 9.99999974E-6 : f32
    %286 = vector.broadcast %cst_91 : f32 to vector<16x1xf32>
    %287 = arith.addf %283, %286 : vector<16x1xf32>
    %288 = math.rsqrt %287 : vector<16x1xf32>
    %289 = vector.broadcast %288 : vector<16x1xf32> to vector<16x32xf32>
    %290 = arith.mulf %285, %289 : vector<16x32xf32>
    %291 = vector.broadcast %271 : vector<1x32xf32> to vector<16x32xf32>
    %292 = arith.mulf %290, %291 : vector<16x32xf32>
    %293 = vector.broadcast %272 : vector<1x32xf32> to vector<16x32xf32>
    %294 = arith.addf %292, %293 : vector<16x32xf32>
    %c144 = arith.constant 144 : index
    %c0_92 = arith.constant 0 : index
    %295 = vector.load %arg1[%c144, %c0_92] : memref<760x128xf32, #tpu.memory_space<vmem>>, vector<32x128xf32>
    %cst_93 = arith.constant dense<0.000000e+00> : vector<16x128xf32>
    %296 = tpu.matmul %294, %295, %cst_93 {dimension_numbers = #tpu.dot_dimension_numbers<[1], [0], [0], [1], [0, 0, 1, 1], [], []>} : vector<16x32xf32>, vector<32x128xf32>, vector<16x128xf32> -> vector<16x128xf32>
    %c176 = arith.constant 176 : index
    %c0_94 = arith.constant 0 : index
    %297 = vector.load %arg1[%c176, %c0_94] : memref<760x128xf32, #tpu.memory_space<vmem>>, vector<1x128xf32>
    %298 = vector.broadcast %297 : vector<1x128xf32> to vector<16x128xf32>
    %299 = arith.addf %296, %298 : vector<16x128xf32>
    %c0_95 = arith.constant 0 : index
    %c0_96 = arith.constant 0 : index
    %300 = vector.load %arg2[%c0_95, %c0_96] : memref<16x128xf32, #tpu.memory_space<vmem>>, vector<16x128xf32>
    tpu.vector_store %arg2[%c0_95, %c0_96], %299 {strides = array<i32>} : memref<16x128xf32, #tpu.memory_space<vmem>>, vector<16x128xf32>,
    return
  }
}

</mosaic_0001>

<bundles_post_ra>
// kernel: simple_llm_forward.1
= control target key start
LH: loop header
LB: loop body
LE: loop exit
PB: predicated region body
PF: predicated region fallthrough
CT: control target
= control target key end

     0   :  { %7 = vsyncpa [#allocation3], 0  ;;  %s5047_s0 = inlined_call_operand.vmem [shape: s32[16,1], index: 0, kind: input, shape index: {}]   ;;  %s5048_s1 = inlined_call_operand.hbm [shape: f32[760,128], index: 1, kind: input, shape index: {}]   ;;  %s5049_s2 = inlined_call_operand.hbm [shape: f32[16,128], index: 2, kind: output, shape index: {}]  }
   0x1   :  { %8 = vsyncpa [#allocation4], 0  ;;  %s4584_s9 = smov [#allocation2]  }
   0x2   :  { %s16_s10 = sshll.u32 %s4584_s9, 4  ;;  %s17_s10 = int_to_ptr.vmem [resolvable:$true] %s16_s10 }
   0x3   :  { %s4548_s11 = scalar_lea.vmem %s17_s10, 12160  ;;  %p4553_p1 = scmp.lt.s32.totalorder %s17_s10, %s17_s10 }
   0x4   :  { %p4549_p0 = scmp.ne.s32.totalorder %s17_s10, %s4548_s11  ;;  %p4554_p2 = scmp.lt.s32.totalorder %s4548_s11, %s4548_s11 }
   0x6   :  { %p4555_p3 = por %p4554_p2, %p4553_p1 }
   0x8   :  { %p4556_p4 = pnand %p4555_p3, %p4549_p0 }
   0xa   :  { %4559 = shalt.err (!%p4556_p4)
}
   0xb   :  { %s4585_s12 = smov 128   ;;  %s4586_s13 = smov 8  }
   0xc   :  { %22 = dma.hbm_to_vmem [thread:$0]  %s5048_s1, 12160, %s17_s10, [#allocation3], %s4585_s12, %s4585_s12, %s4586_s13  }
   0xd   :  { %4580 = dma.done.wait [#allocation3], 12160  }
   0xe   :  { %4581 = vsyncadd [#allocation3], 4294955136  ;;  %v4587_v0 = vmov 0   ;;  %v26_v1 = vld [vmem:[%s5047_s0] sm:$0xff]  ;;  %v57_v2 = vld [vmem:[#allocation2 + $0x78] sm:$0xff]  ;;  %v28_v20 = vlaneseq  ;;  %v4588_v23 = vmov 1.0  }
   0xf   :  { %4459 = vset.pattern.permute.xlu0 %v4587_v0  ;;  %4095 = vmatprep.subr.mxu0 %v57_v2  ;;  %v56_v3 = vld [vmem:[#allocation2 + $0x70] sm:$0xff]  ;;  %v27_v4 = vld [vmem:[%s5047_s0 + $0x8] sm:$0xff]  ;;  %v54_v6 = vld [vmem:[#allocation2 + $0x60] sm:$0xff]  ;;  %vm147_vm2 = vcmask 261120   ;;  %v4589_v33 = vmov 0.0   ;;  %vm4590_vm3 = vmmov 0  }
  0x10   :  { %31 = vperm.xlu0 %4459, %v26_v1   ;;  %4096 = vmatpush3.msra.mxu0 %v57_v2  ;;  %v55_v5 = vld [vmem:[#allocation2 + $0x68] sm:$0xff]  ;;  %v53_v7 = vld [vmem:[#allocation2 + $0x58] sm:$0xff]  ;;  %v141_v8 = vld [vmem:[#allocation2 + $0xd0] sm:$0xff]  ;;  %v29_v21 = vand.u32 127, %v28_v20  ;;  %s4591_s0 = smov 96   ;;  %vm232_vm4 = vcmask 64512  }
  0x11   :  { %4097 = vmatprep.subr.mxu0 %v56_v3  ;;  %4130 = vmatprep.subr.mxu1 %v141_v8  ;;  %v52_v9 = vld [vmem:[#allocation2 + $0x50] sm:$0xff]  ;;  %v51_v10 = vld [vmem:[#allocation2 + $0x48] sm:$0xff]  ;;  %v50_v11 = vld [vmem:[#allocation2 + $0x40] sm:$0xff]  ;;  %v135_v41 = vshrl.u32 %v28_v20, 7  ;;  %v4592_v42 = vmov -1e+30  }
  0x12   :  { %4098 = vmatpush3.msra.mxu0 %v56_v3  ;;  %4131 = vmatpush3.msra.mxu1 %v141_v8  ;;  %v49_v12 = vld [vmem:[#allocation2 + $0x38] sm:$0xff]  ;;  %v48_v13 = vld [vmem:[#allocation2 + $0x30] sm:$0xff]  ;;  %v47_v14 = vld [vmem:[#allocation2 + $0x28] sm:$0xff]  ;;  %s4593_s1 = smov 64   ;;  %s4594_s20 = smov 88   ;;  %vm1577_vm6 = vcmask 195584  }
  0x13   :  { %4099 = vmatprep.subr.mxu0 %v55_v5  ;;  %v46_v15 = vld [vmem:[#allocation2 + $0x20] sm:$0xff]  ;;  %v45_v16 = vld [vmem:[#allocation2 + $0x18] sm:$0xff]  ;;  %v44_v17 = vld [vmem:[#allocation2 + $0x10] sm:$0xff]  ;;  %vm136_vm5 = vcmp.le.s32.totalorder %v29_v21, %v135_v41  ;;  %s4595_s21 = smov 120   ;;  %s4596_s22 = smov 56   ;;  %vm1574_vm7 = vcmask 130048  }
  0x14   :  { %34 = vperm.xlu0 %4459, %v27_v4   ;;  %4100 = vmatpush3.msra.mxu0 %v55_v5  ;;  %v43_v18 = vld [vmem:[#allocation2 + $0x8] sm:$0xff]  ;;  %v42_v19 = vld [vmem:[#allocation2] sm:$0xff]  ;;  %v138_v27 = vld [vmem:[#allocation2 + $0xb8] sm:$0xff]  ;;  %v4667_v43 = vsel %vm136_vm5, 0.0, %v4592_v42  ;;  %s4597_s23 = smov 80   ;;  %s4598_s24 = smov 112  }
  0x15   :  { %4101 = vmatprep.subr.mxu0 %v54_v6  ;;  %v140_v25 = vld [vmem:[#allocation2 + $0xc8] sm:$0xff]  ;;  %v139_v26 = vld [vmem:[#allocation2 + $0xc0] sm:$0xff]  ;;  %v3856_v35 = vld [vmem:[#allocation2 + $0xd8] ss:$0 sm:$0xff]  ;;  %s4599_s25 = smov 48   ;;  %s4600_s26 = smov 72  }
  0x16   :  { %4102 = vmatpush3.msra.mxu0 %v54_v6  ;;  %4132 = vmatprep.subr.mxu1 %v140_v25  ;;  %v58_v29 = vld [vmem:[#allocation2 + $0x80] sm:$0xff]  ;;  %s4601_s27 = smov 104   ;;  %s4602_s28 = smov 40  }
  0x17   :  { %4103 = vmatprep.subr.mxu0 %v53_v7  ;;  %4133 = vmatpush3.msra.mxu1 %v140_v25  ;;  %s4603_s29 = smov 16   ;;  %s4604_s30 = smov 24  }
  0x18   :  { %4104 = vmatpush3.msra.mxu0 %v53_v7  ;;  %4134 = vmatprep.subr.mxu1 %v139_v26  ;;  %s4605_s3 = smov [#allocation5]  }
  0x19   :  { %4105 = vmatprep.subr.mxu0 %v52_v9  ;;  %4135 = vmatpush3.msra.mxu1 %v139_v26  ;;  %s3840_s4 = sshll.u32 %s4605_s3, 4  ;;  %s3841_s4 = int_to_ptr.vmem [resolvable:$true] %s3840_s4 }
  0x1a   :  { %4106 = vmatpush3.msra.mxu0 %v52_v9  ;;  %4136 = vmatprep.subr.mxu1 %v138_v27  ;;  %s4560_s5 = scalar_lea.vmem %s3841_s4, 256  ;;  %p4565_p6 = scmp.lt.s32.totalorder %s3841_s4, %s3841_s4 }
  0x1b   :  { %4107 = vmatprep.subr.mxu0 %v51_v10  ;;  %4137 = vmatpush3.msra.mxu1 %v138_v27  ;;  %p4561_p5 = scmp.ne.s32.totalorder %s3841_s4, %s4560_s5  ;;  %p4566_p7 = scmp.lt.s32.totalorder %s4560_s5, %s4560_s5 }
  0x1c   :  { %4108 = vmatpush3.msra.mxu0 %v51_v10  ;;  %4141 = vmatprep.subr.mxu1 %v4589_v33 }
  0x1d   :  { %4109 = vmatprep.subr.mxu0 %v50_v11  ;;  %p4567_p8 = por %p4566_p7, %p4565_p6 }
  0x1e   :  { %4110 = vmatpush3.msra.mxu0 %v50_v11 }
  0x1f   :  { %4111 = vmatprep.subr.mxu0 %v49_v12  ;;  %p4568_p9 = pnand %p4567_p8, %p4561_p5 }
  0x20   :  { %4112 = vmatpush3.msra.mxu0 %v49_v12 }
  0x21   :  { %4113 = vmatprep.subr.mxu0 %v48_v13 }
  0x22   :  { %4114 = vmatpush3.msra.mxu0 %v48_v13 }
  0x23   :  { %4115 = vmatprep.subr.mxu0 %v47_v14 }
  0x24   :  { %4116 = vmatpush3.msra.mxu0 %v47_v14 }
  0x25   :  { %4117 = vmatprep.subr.mxu0 %v46_v15 }
  0x26   :  { %4118 = vmatpush3.msra.mxu0 %v46_v15 }
  0x27   :  { %4119 = vmatprep.subr.mxu0 %v45_v16 }
  0x28   :  { %4120 = vmatpush3.msra.mxu0 %v45_v16 }
  0x29   :  { %4121 = vmatprep.subr.mxu0 %v44_v17 }
  0x2a   :  { %4122 = vmatpush3.msra.mxu0 %v44_v17 }
  0x2b   :  { %4123 = vmatprep.subr.mxu0 %v43_v18 }
  0x2c   :  { %4124 = vmatpush3.msra.mxu0 %v43_v18 }
  0x2d   :  { %4125 = vmatprep.subr.mxu0 %v42_v19 }
  0x2e   :  { %4126 = vmatpush3.msra.mxu0 %v42_v19 }
  0x2f   :  { %4181 = vmatprep.subr.mxu0 %v4589_v33 }
  0x8b   :  { %v32_v22 = vpop.permute.xlu0 %31 }
  0x8c   :  { %vm36_vm0 = vcmp.eq.s32.totalorder %v29_v21, %v32_v22 }
  0x8d   :  { %4127 = vmatprep.mubr.msk.f32.mxu0 %vm36_vm0, %v4588_v23 }
  0x8f   :  { %v35_v24 = vpop.permute.xlu0 %34 }
  0x90   :  { %vm37_vm1 = vcmp.eq.s32.totalorder %v29_v21, %v35_v24 }
  0x91   :  { %4128 = vmatmul.mubr.msk.f32.vlgmr.msra.gmra.mxu0 %vm37_vm1, %v4588_v23 }
  0x92   :  { %4183 = vmatprep.mubr.msk.f32.mxu0 %vm4590_vm3, %v4589_v33 }
 0x151   :  { %v4129_v28 = vpop.f32.mrf.mxu0 }
 0x152   :  { %v4635_v32 = vadd.f32 %v4129_v28, %v58_v29 }
 0x153   :  { %v125_v30 = vpop.f32.mrf.mxu0 }
 0x154   :  { %v4633_v31 = vadd.f32 %v125_v30, %v58_v29 }
 0x156   :  { %4138 = vmatprep.mubr.msk.f32.mxu1 %vm147_vm2, %v4633_v31 }
 0x157   :  { %4139 = vmatmul.mubr.msk.f32.vlgmr.msra.gmra.mxu1 %vm147_vm2, %v4635_v32 }
 0x158   :  { %4143 = vmatprep.mubr.msk.f32.mxu1 %vm4590_vm3, %v4589_v33 }
 0x217   :  { %v4140_v34 = vpop.f32.mrf.mxu1 }
 0x218   :  { %v4651_v38 = vadd.f32 %v4140_v34, %v3856_v35 }
 0x219   :  { %v220_v36 = vpop.f32.mrf.mxu1 }
 0x21a   :  { %v4647_v37 = vadd.f32 %v3856_v35, %v220_v36 }
 0x21c   :  { %230 = vrot.lane.b32.xlu1 %v4647_v37, %s4591_s0 }
 0x220   :  { %308 = vrot.lane.b32.xlu1 %v4651_v38, %s4591_s0 }
 0x28e   :  { %v231_v39 = vpop.permute.xlu1 %230 }
 0x28f   :  { %4142 = vmatpush3.xpose.msk.msra.mxu1 %vm232_vm4, %v231_v39 }
 0x290   :  { %4146 = vmatprep.subr.mxu1 %v4589_v33 }
 0x292   :  { %4144 = vmatmul.mubr.msk.f32.vlgmr.msra.gmra.mxu1 %vm232_vm4, %v4647_v37  ;;  %v309_v40 = vpop.permute.xlu1 %308 }
 0x293   :  { %4147 = vmatpush3.xpose.msk.msra.mxu1 %vm232_vm4, %v309_v40  ;;  %4148 = vmatprep.mubr.msk.f32.mxu1 %vm4590_vm3, %v4589_v33 }
 0x294   :  { %4151 = vmatprep.subr.mxu1 %v4589_v33 }
 0x296   :  { %4149 = vmatmul.mubr.msk.f32.vlgmr.msra.gmra.mxu1 %vm232_vm4, %v4651_v38 }
 0x297   :  { %4153 = vmatprep.mubr.msk.f32.mxu1 %vm4590_vm3, %v4589_v33 }
 0x352   :  { %v303_v44 = vpop.f32.mrf.mxu1 }
 0x353   :  { %v304_v45 = vadd.f32 %v303_v44, %v4667_v43 }
 0x354   :  { %v4145_v46 = vpop.f32.mrf.mxu1 }
 0x355   :  { %v384_v47 = vsel %vm232_vm4, %v304_v45, -inf }
 0x356   :  { %385 = vmax.xlane.f32.xlu0 %v384_v47  ;;  %v380_v48 = vpop.f32.mrf.mxu1 }
 0x357   :  { %v381_v49 = vadd.f32 %v380_v48, %v4667_v43 }
 0x358   :  { %v4150_v50 = vpop.f32.mrf.mxu1 }
 0x359   :  { %v387_v51 = vsel %vm232_vm4, %v381_v49, -inf }
 0x35a   :  { %388 = vmax.xlane.f32.xlu1 %v387_v51 }
 0x36b   :  { %406 = vrot.lane.b32.xlu1 %v4647_v37, %s4593_s1 }
 0x36f   :  { %560 = vrot.lane.b32.xlu1 %v4647_v37, %s4594_s20 }
 0x373   :  { %558 = vrot.lane.b32.xlu1 %v4647_v37, %s4595_s21 }
 0x377   :  { %636 = vrot.lane.b32.xlu1 %v4651_v38, %s4595_s21 }
 0x3df   :  { %v386_v52 = vpop.xlane.xlu0 %385 }
 0x3e0   :  { %v390_v53 = vsub.f32 %v304_v45, %v386_v52 }
 0x3e2   :  { %v392_v54 = vmul.f32 1.442695, %v390_v53 }
 0x3e3   :  { %v389_v55 = vpop.xlane.xlu1 %388 }
 0x3e4   :  { %4460 = vpow2.f32 %v392_v54  ;;  %v391_v56 = vsub.f32 %v381_v49, %v389_v55 }
 0x3e6   :  { %v394_v57 = vmul.f32 1.442695, %v391_v56 }
 0x3e7   :  { %v407_v58 = vpop.permute.xlu1 %406 }
 0x3e8   :  { %4462 = vpow2.f32 %v394_v57  ;;  %4152 = vmatpush3.msra.mxu1 %v407_v58 }
 0x3e9   :  { %4156 = vmatprep.subr.mxu1 %v4589_v33 }
 0x3eb   :  { %v561_v3 = vpop.permute.xlu1 %560 }
 0x3ef   :  { %v559_v7 = vpop.permute.xlu1 %558 }
 0x3f1   :  { %v4461_v59 = vpop.eup %4460 }
 0x3f2   :  { %v396_v60 = vsel %vm232_vm4, %v4461_v59, 0.0 }
 0x3f3   :  { %397 = vadd.xlane.f32.xlu0 %v396_v60  ;;  %v637_v9 = vpop.permute.xlu1 %636 }
 0x3f5   :  { %v4463_v61 = vpop.eup %4462 }
 0x3f6   :  { %v399_v62 = vsel %vm232_vm4, %v4463_v61, 0.0 }
 0x3f7   :  { %400 = vadd.xlane.f32.xlu0 %v399_v62 }
 0x40d   :  { %482 = vrot.lane.b32.xlu0 %v4651_v38, %s4593_s1 }
 0x411   :  { %638 = vrot.lane.b32.xlu0 %v4651_v38, %s4594_s20 }
 0x47c   :  { %v398_v63 = vpop.xlane.xlu0 %397 }
 0x47d   :  { %4464 = vrcp.f32 %v398_v63 }
 0x480   :  { %v401_v0 = vpop.xlane.xlu0 %400 }
 0x481   :  { %4466 = vrcp.f32 %v401_v0 }
 0x484   :  { %v483_v4 = vpop.permute.xlu0 %482 }
 0x488   :  { %v639_v8 = vpop.permute.xlu0 %638 }
 0x48a   :  { %v4465_v1 = vpop.eup %4464 }
 0x48b   :  { %v404_v2 = vmul.f32 %v4465_v1, %v4461_v59 }
 0x48d   :  { %4154 = vmatmul.mubr.msk.f32.vlgmr.msra.gmra.mxu1 %vm232_vm4, %v404_v2 }
 0x48e   :  { %v4467_v5 = vpop.eup %4466  ;;  %4157 = vmatpush3.msra.mxu1 %v483_v4  ;;  %4158 = vmatprep.mubr.msk.f32.mxu1 %vm4590_vm3, %v4589_v33 }
 0x48f   :  { %4161 = vmatprep.subr.mxu1 %v4589_v33  ;;  %v405_v6 = vmul.f32 %v4467_v5, %v4463_v61 }
 0x491   :  { %4159 = vmatmul.mubr.msk.f32.vlgmr.msra.gmra.mxu1 %vm232_vm4, %v405_v6 }
 0x492   :  { %4162 = vmatpush3.xpose.msk.msra.mxu1 %vm232_vm4, %v561_v3  ;;  %4163 = vmatprep.mubr.msk.f32.mxu1 %vm4590_vm3, %v4589_v33 }
 0x493   :  { %4166 = vmatprep.subr.mxu1 %v4589_v33 }
 0x495   :  { %4164 = vmatmul.mubr.msk.f32.vlgmr.msra.gmra.mxu1 %vm232_vm4, %v559_v7 }
 0x496   :  { %4167 = vmatpush3.xpose.msk.msra.mxu1 %vm232_vm4, %v639_v8  ;;  %4168 = vmatprep.mubr.msk.f32.mxu1 %vm4590_vm3, %v4589_v33 }
 0x497   :  { %4171 = vmatprep.subr.mxu1 %v4589_v33 }
 0x499   :  { %4169 = vmatmul.mubr.msk.f32.vlgmr.msra.gmra.mxu1 %vm232_vm4, %v637_v9 }
 0x49a   :  { %4173 = vmatprep.mubr.msk.f32.mxu1 %vm4590_vm3, %v4589_v33 }
 0x54d   :  { %v4705_v10 = vpop.f32.mrf.mxu1 }
 0x54f   :  { %v4155_v11 = vpop.f32.mrf.mxu1 }
 0x551   :  { %v4707_v12 = vpop.f32.mrf.mxu1 }
 0x553   :  { %v4160_v13 = vpop.f32.mrf.mxu1 }
 0x555   :  { %v632_v14 = vpop.f32.mrf.mxu1 }
 0x556   :  { %v633_v15 = vadd.f32 %v632_v14, %v4667_v43 }
 0x557   :  { %v4165_v16 = vpop.f32.mrf.mxu1 }
 0x558   :  { %v714_v17 = vsel %vm232_vm4, %v633_v15, -inf }
 0x559   :  { %715 = vmax.xlane.f32.xlu0 %v714_v17  ;;  %v710_v18 = vpop.f32.mrf.mxu1 }
 0x55a   :  { %v711_v19 = vadd.f32 %v710_v18, %v4667_v43 }
 0x55b   :  { %v4170_v20 = vpop.f32.mrf.mxu1 }
 0x55c   :  { %v717_v21 = vsel %vm232_vm4, %v711_v19, -inf }
 0x55d   :  { %718 = vmax.xlane.f32.xlu1 %v717_v21 }
 0x56e   :  { %736 = vrot.lane.b32.xlu1 %v4647_v37, %s4596_s22 }
 0x56f   :  { %812 = vrot.lane.b32.xlu0 %v4651_v38, %s4596_s22 }
 0x572   :  { %890 = vrot.lane.b32.xlu1 %v4647_v37, %s4597_s23 }
 0x576   :  { %968 = vrot.lane.b32.xlu1 %v4651_v38, %s4597_s23 }
 0x57a   :  { %966 = vrot.lane.b32.xlu1 %v4651_v38, %s4598_s24 }
 0x5e2   :  { %v716_v22 = vpop.xlane.xlu0 %715 }
 0x5e3   :  { %v720_v23 = vsub.f32 %v633_v15, %v716_v22 }
 0x5e5   :  { %v722_v24 = vmul.f32 1.442695, %v720_v23 }
 0x5e6   :  { %v719_v25 = vpop.xlane.xlu1 %718  ;;  %v813_v39 = vpop.permute.xlu0 %812 }
 0x5e7   :  { %4468 = vpow2.f32 %v722_v24  ;;  %v721_v26 = vsub.f32 %v711_v19, %v719_v25 }
 0x5e9   :  { %v724_v27 = vmul.f32 1.442695, %v721_v26 }
 0x5ea   :  { %v737_v28 = vpop.permute.xlu1 %736 }
 0x5eb   :  { %4470 = vpow2.f32 %v724_v27  ;;  %4172 = vmatpush3.msra.mxu1 %v737_v28 }
 0x5ec   :  { %4176 = vmatprep.subr.mxu1 %v4589_v33 }
 0x5ee   :  { %v891_v29 = vpop.permute.xlu1 %890 }
 0x5ef   :  { %4182 = vmatpush3.xpose.msk.msra.mxu0 %vm232_vm4, %v891_v29 }
 0x5f0   :  { %4191 = vmatprep.subr.mxu0 %v4589_v33 }
 0x5f2   :  { %v969_v47 = vpop.permute.xlu1 %968 }
 0x5f4   :  { %v4469_v30 = vpop.eup %4468 }
 0x5f5   :  { %v726_v34 = vsel %vm232_vm4, %v4469_v30, 0.0 }
 0x5f6   :  { %727 = vadd.xlane.f32.xlu0 %v726_v34  ;;  %v967_v49 = vpop.permute.xlu1 %966 }
 0x5f8   :  { %v4471_v35 = vpop.eup %4470 }
 0x5f9   :  { %v729_v36 = vsel %vm232_vm4, %v4471_v35, 0.0 }
 0x5fa   :  { %730 = vadd.xlane.f32.xlu0 %v729_v36 }
 0x610   :  { %888 = vrot.lane.b32.xlu0 %v4647_v37, %s4598_s24 }
 0x67f   :  { %v728_v40 = vpop.xlane.xlu0 %727 }
 0x680   :  { %4472 = vrcp.f32 %v728_v40 }
 0x683   :  { %v731_v41 = vpop.xlane.xlu0 %730 }
 0x684   :  { %4474 = vrcp.f32 %v731_v41 }
 0x687   :  { %v889_v42 = vpop.permute.xlu0 %888 }
 0x688   :  { %4184 = vmatmul.mubr.msk.f32.vlgmr.msra.gmra.mxu0 %vm232_vm4, %v889_v42 }
 0x689   :  { %4193 = vmatprep.mubr.msk.f32.mxu0 %vm4590_vm3, %v4589_v33 }
 0x68d   :  { %v4473_v44 = vpop.eup %4472 }
 0x68e   :  { %v734_v45 = vmul.f32 %v4473_v44, %v4469_v30 }
 0x690   :  { %4174 = vmatmul.mubr.msk.f32.vlgmr.msra.gmra.mxu1 %vm232_vm4, %v734_v45 }
 0x691   :  { %v4475_v46 = vpop.eup %4474  ;;  %4177 = vmatpush3.msra.mxu1 %v813_v39  ;;  %4178 = vmatprep.mubr.msk.f32.mxu1 %vm4590_vm3, %v4589_v33 }
 0x692   :  { %4186 = vmatprep.subr.mxu1 %v4589_v33  ;;  %v735_v48 = vmul.f32 %v4475_v46, %v4471_v35 }
 0x694   :  { %4179 = vmatmul.mubr.msk.f32.vlgmr.msra.gmra.mxu1 %vm232_vm4, %v735_v48 }
 0x695   :  { %4187 = vmatpush3.xpose.msk.msra.mxu1 %vm232_vm4, %v969_v47  ;;  %4188 = vmatprep.mubr.msk.f32.mxu1 %vm4590_vm3, %v4589_v33 }
 0x696   :  { %4196 = vmatprep.subr.mxu1 %v4589_v33 }
 0x698   :  { %4189 = vmatmul.mubr.msk.f32.vlgmr.msra.gmra.mxu1 %vm232_vm4, %v967_v49 }
 0x699   :  { %4198 = vmatprep.mubr.msk.f32.mxu1 %vm4590_vm3, %v4589_v33 }
 0x748   :  { %v962_v50 = vpop.f32.mrf.mxu0 }
 0x749   :  { %v963_v51 = vadd.f32 %v962_v50, %v4667_v43 }
 0x74a   :  { %v4185_v52 = vpop.f32.mrf.mxu0 }
 0x74b   :  { %v1044_v53 = vsel %vm232_vm4, %v963_v51, -inf }
 0x74c   :  { %1045 = vmax.xlane.f32.xlu0 %v1044_v53 }
 0x750   :  { %v4747_v54 = vpop.f32.mrf.mxu1 }
 0x752   :  { %v4175_v55 = vpop.f32.mrf.mxu1 }
 0x754   :  { %v4749_v56 = vpop.f32.mrf.mxu1 }
 0x756   :  { %v4180_v57 = vpop.f32.mrf.mxu1 }
 0x757   :  { %v1583_v57 = vld [vmem:[#allocation2 + $0xf8] sm:$0xff] }
 0x758   :  { %v1040_v58 = vpop.f32.mrf.mxu1 }
 0x759   :  { %v1041_v59 = vadd.f32 %v1040_v58, %v4667_v43  ;;  %v1582_v58 = vld [vmem:[#allocation2 + $0xf0] sm:$0xff] }
 0x75a   :  { %v4190_v60 = vpop.f32.mrf.mxu1 }
 0x75b   :  { %v1047_v61 = vsel %vm232_vm4, %v1041_v59, -inf }
 0x75c   :  { %1048 = vmax.xlane.f32.xlu1 %v1047_v61 }
 0x76d   :  { %1066 = vrot.lane.b32.xlu1 %v4647_v37, %s4599_s25 }
 0x771   :  { %1220 = vrot.lane.b32.xlu1 %v4647_v37, %s4600_s26 }
 0x775   :  { %1298 = vrot.lane.b32.xlu1 %v4651_v38, %s4600_s26 }
 0x779   :  { %1296 = vrot.lane.b32.xlu1 %v4651_v38, %s4601_s27 }
 0x7d5   :  { %v1046_v62 = vpop.xlane.xlu0 %1045 }
 0x7d6   :  { %v1050_v63 = vsub.f32 %v963_v51, %v1046_v62 }
 0x7d8   :  { %v1052_v0 = vmul.f32 1.442695, %v1050_v63 }
 0x7da   :  { %4476 = vpow2.f32 %v1052_v0 }
 0x7e5   :  { %v1049_v1 = vpop.xlane.xlu1 %1048 }
 0x7e6   :  { %v1051_v5 = vsub.f32 %v1041_v59, %v1049_v1  ;;  %v1580_v59 = vld [vmem:[#allocation2 + $0xe0] sm:$0xff] }
 0x7e7   :  { %v4477_v2 = vpop.eup %4476 }
 0x7e8   :  { %v1056_v3 = vsel %vm232_vm4, %v4477_v2, 0.0  ;;  %v1054_v6 = vmul.f32 1.442695, %v1051_v5 }
 0x7e9   :  { %1057 = vadd.xlane.f32.xlu0 %v1056_v3  ;;  %v1067_v4 = vpop.permute.xlu1 %1066 }
 0x7ea   :  { %4192 = vmatpush3.msra.mxu0 %v1067_v4  ;;  %4478 = vpow2.f32 %v1054_v6 }
 0x7eb   :  { %4201 = vmatprep.subr.mxu0 %v4589_v33 }
 0x7ed   :  { %v1221_v15 = vpop.permute.xlu1 %1220 }
 0x7f1   :  { %v1299_v19 = vpop.permute.xlu1 %1298 }
 0x7f5   :  { %v1297_v21 = vpop.permute.xlu1 %1296 }
 0x7f7   :  { %v4479_v7 = vpop.eup %4478 }
 0x7f8   :  { %v1059_v8 = vsel %vm232_vm4, %v4479_v7, 0.0 }
 0x7ff   :  { %1142 = vrot.lane.b32.xlu0 %v4651_v38, %s4599_s25 }
 0x81e   :  { %1060 = vadd.xlane.f32.xlu0 %v1059_v8 }
 0x834   :  { %1218 = vrot.lane.b32.xlu0 %v4647_v37, %s4601_s27 }
 0x872   :  { %v1058_v9 = vpop.xlane.xlu0 %1057 }
 0x873   :  { %4480 = vrcp.f32 %v1058_v9 }
 0x876   :  { %v1143_v11 = vpop.permute.xlu0 %1142 }
 0x877   :  { %4197 = vmatpush3.msra.mxu1 %v1143_v11 }
 0x878   :  { %4206 = vmatprep.subr.mxu1 %v4589_v33 }
 0x880   :  { %v4481_v13 = vpop.eup %4480 }
 0x881   :  { %v1064_v14 = vmul.f32 %v4481_v13, %v4477_v2 }
 0x883   :  { %4194 = vmatmul.mubr.msk.f32.vlgmr.msra.gmra.mxu0 %vm232_vm4, %v1064_v14 }
 0x884   :  { %4202 = vmatpush3.xpose.msk.msra.mxu0 %vm232_vm4, %v1221_v15  ;;  %4203 = vmatprep.mubr.msk.f32.mxu0 %vm4590_vm3, %v4589_v33 }
 0x885   :  { %4211 = vmatprep.subr.mxu0 %v4589_v33 }
 0x8a7   :  { %v1061_v16 = vpop.xlane.xlu0 %1060 }
 0x8a8   :  { %4482 = vrcp.f32 %v1061_v16 }
 0x8ab   :  { %v1219_v17 = vpop.permute.xlu0 %1218 }
 0x8ac   :  { %4204 = vmatmul.mubr.msk.f32.vlgmr.msra.gmra.mxu0 %vm232_vm4, %v1219_v17 }
 0x8ad   :  { %4213 = vmatprep.mubr.msk.f32.mxu0 %vm4590_vm3, %v4589_v33 }
 0x8b5   :  { %v4483_v18 = vpop.eup %4482 }
 0x8b6   :  { %v1065_v20 = vmul.f32 %v4483_v18, %v4479_v7 }
 0x8b8   :  { %4199 = vmatmul.mubr.msk.f32.vlgmr.msra.gmra.mxu1 %vm232_vm4, %v1065_v20 }
 0x8b9   :  { %4207 = vmatpush3.xpose.msk.msra.mxu1 %vm232_vm4, %v1299_v19  ;;  %4208 = vmatprep.mubr.msk.f32.mxu1 %vm4590_vm3, %v4589_v33 }
 0x8ba   :  { %4216 = vmatprep.subr.mxu1 %v4589_v33 }
 0x8bc   :  { %4209 = vmatmul.mubr.msk.f32.vlgmr.msra.gmra.mxu1 %vm232_vm4, %v1297_v21 }
 0x8bd   :  { %4218 = vmatprep.mubr.msk.f32.mxu1 %vm4590_vm3, %v4589_v33 }
 0x943   :  { %v1138_v22 = vpop.f32.mrf.mxu0 }
 0x945   :  { %v4195_v23 = vpop.f32.mrf.mxu0 }
 0x96c   :  { %v1292_v24 = vpop.f32.mrf.mxu0 }
 0x96d   :  { %v1293_v25 = vadd.f32 %v1292_v24, %v4667_v43 }
 0x96e   :  { %v4205_v26 = vpop.f32.mrf.mxu0 }
 0x96f   :  { %v1374_v27 = vsel %vm232_vm4, %v1293_v25, -inf }
 0x970   :  { %1375 = vmax.xlane.f32.xlu0 %v1374_v27 }
 0x978   :  { %v1214_v28 = vpop.f32.mrf.mxu1 }
 0x97a   :  { %v4200_v29 = vpop.f32.mrf.mxu1 }
 0x97b   :  { %v1716_v29 = vld [vmem:[#allocation2 + $0x130] sm:$0xff] }
 0x97c   :  { %v1370_v30 = vpop.f32.mrf.mxu1 }
 0x97d   :  { %v1371_v34 = vadd.f32 %v1370_v30, %v4667_v43  ;;  %v1715_v30 = vld [vmem:[#allocation2 + $0x128] sm:$0xff] }
 0x97e   :  { %v4210_v35 = vpop.f32.mrf.mxu1 }
 0x97f   :  { %v1377_v36 = vsel %vm232_vm4, %v1371_v34, -inf  ;;  %v1713_v35 = vld [vmem:[#allocation2 + $0x118] sm:$0xff] }
 0x980   :  { %1378 = vmax.xlane.f32.xlu1 %v1377_v36  ;;  %v1820_v36 = vld [vmem:[#allocation2 + $0x1b8] sm:$0xff] }
 0x991   :  { %1396 = vrot.lane.b32.xlu1 %v4647_v37, %s4602_s28 }
 0x995   :  { %1550 = vrot.lane.b32.xlu1 %v4747_v54, %s4586_s13 }
 0x999   :  { %1552 = vrot.lane.b32.xlu1 %v4749_v56, %s4586_s13 }
 0x99d   :  { %1560 = vrot.lane.b32.xlu1 %v1214_v28, %s4603_s29 }
 0x9f9   :  { %v1376_v39 = vpop.xlane.xlu0 %1375 }
 0x9fa   :  { %v1380_v40 = vsub.f32 %v1293_v25, %v1376_v39  ;;  %v1819_v39 = vld [vmem:[#allocation2 + $0x1b0] sm:$0xff] }
 0x9fc   :  { %v1382_v41 = vmul.f32 1.442695, %v1380_v40  ;;  %v1818_v40 = vld [vmem:[#allocation2 + $0x1a8] sm:$0xff] }
 0x9fe   :  { %4484 = vpow2.f32 %v1382_v41  ;;  %v1817_v41 = vld [vmem:[#allocation2 + $0x1a0] sm:$0xff] }
 0xa09   :  { %v1379_v42 = vpop.xlane.xlu1 %1378 }
 0xa0a   :  { %v1381_v44 = vsub.f32 %v1371_v34, %v1379_v42  ;;  %v1714_v34 = vld [vmem:[#allocation2 + $0x120] sm:$0xff]  ;;  %v1816_v42 = vld [vmem:[#allocation2 + $0x198] sm:$0xff] }
 0xa0b   :  { %v4485_v45 = vpop.eup %4484 }
 0xa0c   :  { %v1384_v46 = vmul.f32 1.442695, %v1381_v44  ;;  %v1386_v47 = vsel %vm232_vm4, %v4485_v45, 0.0  ;;  %v1815_v44 = vld [vmem:[#allocation2 + $0x190] sm:$0xff] }
 0xa0d   :  { %1387 = vadd.xlane.f32.xlu0 %v1386_v47  ;;  %v1397_v37 = vpop.permute.xlu1 %1396  ;;  %v1812_v47 = vld [vmem:[#allocation2 + $0x178] sm:$0xff] }
 0xa0e   :  { %4486 = vpow2.f32 %v1384_v46  ;;  %4212 = vmatpush3.msra.mxu0 %v1397_v37  ;;  %v1813_v46 = vld [vmem:[#allocation2 + $0x180] sm:$0xff]  ;;  %v1811_v37 = vld [vmem:[#allocation2 + $0x170] sm:$0xff] }
 0xa0f   :  { %4243 = vmatprep.subr.mxu0 %v1820_v36 }
 0xa11   :  { %v1551_v0 = vpop.permute.xlu1 %1550 }
 0xa12   :  { %v1572_v2 = vsel %vm232_vm4, %v4705_v10, %v1551_v0  ;;  %v3883_v10 = vld [vmem:[#allocation2 + $0x100] ss:$0 sm:$0xff] }
 0xa15   :  { %v1553_v6 = vpop.permute.xlu1 %1552 }
 0xa16   :  { %v1573_v8 = vsel %vm232_vm4, %v4707_v12, %v1553_v6 }
 0xa19   :  { %v1561_v7 = vpop.permute.xlu1 %1560 }
 0xa1a   :  { %v1576_v9 = vsel %vm1574_vm7, %v1573_v8, %v1561_v7 }
 0xa1b   :  { %v4487_v48 = vpop.eup %4486 }
 0xa1c   :  { %v1389_v49 = vsel %vm232_vm4, %v4487_v48, 0.0 }
 0xa1d   :  { %1390 = vadd.xlane.f32.xlu0 %v1389_v49  ;;  %v1809_v49 = vld [vmem:[#allocation2 + $0x160] sm:$0xff] }
 0xa33   :  { %1472 = vrot.lane.b32.xlu0 %v4651_v38, %s4602_s28  ;;  %v1581_v38 = vld [vmem:[#allocation2 + $0xe8] sm:$0xff] }
 0xa37   :  { %1558 = vrot.lane.b32.xlu0 %v1138_v22, %s4603_s29 }
 0xa96   :  { %v1388_v50 = vpop.xlane.xlu0 %1387 }
 0xa97   :  { %4488 = vrcp.f32 %v1388_v50 }
 0xaa4   :  { %v4489_v51 = vpop.eup %4488 }
 0xaa5   :  { %v1394_v52 = vmul.f32 %v4489_v51, %v4485_v45  ;;  %v1814_v45 = vld [vmem:[#allocation2 + $0x188] sm:$0xff] }
 0xaa6   :  { %v1391_v53 = vpop.xlane.xlu0 %1390 }
 0xaa7   :  { %4490 = vrcp.f32 %v1391_v53  ;;  %4214 = vmatmul.mubr.msk.f32.vlgmr.msra.gmra.mxu0 %vm232_vm4, %v1394_v52 }
 0xaa8   :  { %4244 = vmatpush3.msra.mxu0 %v1820_v36 }
 0xaa9   :  { %4245 = vmatprep.subr.mxu0 %v1819_v39 }
 0xaaa   :  { %v1473_v54 = vpop.permute.xlu0 %1472  ;;  %4246 = vmatpush3.msra.mxu0 %v1819_v39 }
 0xaab   :  { %4217 = vmatpush3.msra.mxu1 %v1473_v54  ;;  %4247 = vmatprep.subr.mxu0 %v1818_v40 }
 0xaac   :  { %4221 = vmatprep.subr.mxu1 %v1583_v57  ;;  %4248 = vmatpush3.msra.mxu0 %v1818_v40 }
 0xaad   :  { %4249 = vmatprep.subr.mxu0 %v1817_v41 }
 0xaae   :  { %v1559_v1 = vpop.permute.xlu0 %1558  ;;  %4250 = vmatpush3.msra.mxu0 %v1817_v41 }
 0xaaf   :  { %v1575_v3 = vsel %vm1574_vm7, %v1572_v2, %v1559_v1  ;;  %4251 = vmatprep.subr.mxu0 %v1816_v42  ;;  %v1808_v1 = vld [vmem:[#allocation2 + $0x158] sm:$0xff]  ;;  %v1807_v2 = vld [vmem:[#allocation2 + $0x150] sm:$0xff] }
 0xab0   :  { %4252 = vmatpush3.msra.mxu0 %v1816_v42 }
 0xab1   :  { %4253 = vmatprep.subr.mxu0 %v1815_v44 }
 0xab2   :  { %4254 = vmatpush3.msra.mxu0 %v1815_v44 }
 0xab3   :  { %4255 = vmatprep.subr.mxu0 %v1814_v45 }
 0xab4   :  { %v4491_v55 = vpop.eup %4490  ;;  %4256 = vmatpush3.msra.mxu0 %v1814_v45 }
 0xab5   :  { %v1395_v56 = vmul.f32 %v4491_v55, %v4487_v48  ;;  %4257 = vmatprep.subr.mxu0 %v1813_v46  ;;  %v1810_v48 = vld [vmem:[#allocation2 + $0x168] sm:$0xff] }
 0xab6   :  { %4258 = vmatpush3.msra.mxu0 %v1813_v46  ;;  %v3892_v46 = vld [vmem:[#allocation2 + $0x1c8] ss:$0 sm:$0xff] }
 0xab7   :  { %4219 = vmatmul.mubr.msk.f32.vlgmr.msra.gmra.mxu1 %vm232_vm4, %v1395_v56  ;;  %4259 = vmatprep.subr.mxu0 %v1812_v47 }
 0xab8   :  { %4222 = vmatpush3.msra.mxu1 %v1583_v57  ;;  %4260 = vmatpush3.msra.mxu0 %v1812_v47  ;;  %v3886_v57 = vld [vmem:[#allocation2 + $0x108] ss:$0 sm:$0xff] }
 0xab9   :  { %4223 = vmatprep.subr.mxu1 %v1582_v58  ;;  %4261 = vmatprep.subr.mxu0 %v1811_v37 }
 0xaba   :  { %4224 = vmatpush3.msra.mxu1 %v1582_v58  ;;  %4262 = vmatpush3.msra.mxu0 %v1811_v37 }
 0xabb   :  { %4225 = vmatprep.subr.mxu1 %v1581_v38  ;;  %4263 = vmatprep.subr.mxu0 %v1810_v48 }
 0xabc   :  { %4226 = vmatpush3.msra.mxu1 %v1581_v38  ;;  %4264 = vmatpush3.msra.mxu0 %v1810_v48  ;;  %v3887_v38 = vld [vmem:[#allocation2 + $0x110] ss:$0 sm:$0xff] }
 0xabd   :  { %4227 = vmatprep.subr.mxu1 %v1580_v59  ;;  %4265 = vmatprep.subr.mxu0 %v1809_v49 }
 0xabe   :  { %4228 = vmatpush3.msra.mxu1 %v1580_v59  ;;  %4266 = vmatpush3.msra.mxu0 %v1809_v49 }
 0xabf   :  { %4232 = vmatprep.subr.mxu1 %v1716_v29  ;;  %4267 = vmatprep.subr.mxu0 %v1808_v1 }
 0xac0   :  { %4268 = vmatpush3.msra.mxu0 %v1808_v1 }
 0xac1   :  { %4269 = vmatprep.subr.mxu0 %v1807_v2 }
 0xac2   :  { %4270 = vmatpush3.msra.mxu0 %v1807_v2 }
 0xb67   :  { %v1468_v60 = vpop.f32.mrf.mxu0 }
 0xb68   :  { %1566 = vrot.lane.b32.xlu0 %v1468_v60, %s4604_s30 }
 0xb69   :  { %v4215_v61 = vpop.f32.mrf.mxu0 }
 0xb77   :  { %v1544_v62 = vpop.f32.mrf.mxu1 }
 0xb78   :  { %1568 = vrot.lane.b32.xlu1 %v1544_v62, %s4604_s30 }
 0xb79   :  { %v4220_v63 = vpop.f32.mrf.mxu1 }
 0xbda   :  { %v1567_v4 = vpop.permute.xlu0 %1566 }
 0xbdb   :  { %v1578_v5 = vsel %vm1577_vm6, %v1575_v3, %v1567_v4  ;;  %v1806_v3 = vld [vmem:[#allocation2 + $0x148] sm:$0xff]  ;;  %v1805_v4 = vld [vmem:[#allocation2 + $0x140] sm:$0xff] }
 0xbdc   :  { %4229 = vmatprep.mubr.msk.f32.mxu1 %vm147_vm2, %v1578_v5  ;;  %4271 = vmatprep.subr.mxu0 %v1806_v3  ;;  %v3888_v5 = vld [vmem:[#allocation2 + $0x138] ss:$0 sm:$0xff] }
 0xbdd   :  { %4272 = vmatpush3.msra.mxu0 %v1806_v3 }
 0xbde   :  { %4273 = vmatprep.subr.mxu0 %v1805_v4 }
 0xbdf   :  { %4274 = vmatpush3.msra.mxu0 %v1805_v4 }
 0xbe0   :  { %4319 = vmatprep.subr.mxu0 %v4589_v33 }
 0xbea   :  { %v1569_v11 = vpop.permute.xlu1 %1568 }
 0xbeb   :  { %v1579_v13 = vsel %vm1577_vm6, %v1576_v9, %v1569_v11 }
 0xbec   :  { %4230 = vmatmul.mubr.msk.f32.vlgmr.msra.gmra.mxu1 %vm147_vm2, %v1579_v13 }
 0xbed   :  { %4233 = vmatpush3.msra.mxu1 %v1716_v29  ;;  %v1946_v29 = vld [vmem:[#allocation2 + $0x1f0] sm:$0xff] }
 0xbee   :  { %4234 = vmatprep.subr.mxu1 %v1715_v30 }
 0xbef   :  { %4235 = vmatpush3.msra.mxu1 %v1715_v30  ;;  %v1945_v30 = vld [vmem:[#allocation2 + $0x1e8] sm:$0xff] }
 0xbf0   :  { %4236 = vmatprep.subr.mxu1 %v1714_v34 }
 0xbf1   :  { %4237 = vmatpush3.msra.mxu1 %v1714_v34  ;;  %v1944_v34 = vld [vmem:[#allocation2 + $0x1e0] sm:$0xff] }
 0xbf2   :  { %4238 = vmatprep.subr.mxu1 %v1713_v35 }
 0xbf3   :  { %4239 = vmatpush3.msra.mxu1 %v1713_v35  ;;  %v1943_v35 = vld [vmem:[#allocation2 + $0x1d8] sm:$0xff] }
 0xbf4   :  { %4278 = vmatprep.subr.mxu1 %v1946_v29 }
 0xcac   :  { %v4231_v14 = vpop.f32.mrf.mxu1 }
 0xcad   :  { %v1667_v15 = vadd.f32 %v4231_v14, %v3883_v10 }
 0xcae   :  { %v1661_v16 = vpop.f32.mrf.mxu1 }
 0xcaf   :  { %v1662_v17 = vadd.f32 %v3883_v10, %v1661_v16  ;;  %v1671_v18 = vadd.f32 %v1667_v15, %v4635_v32  ;;  %v3891_v10 = vld [vmem:[#allocation2 + $0x1c0] ss:$0 sm:$0xff] }
 0xcb1   :  { %v1677_v19 = vsel %vm147_vm2, %v1671_v18, 0.0  ;;  %v1670_v20 = vadd.f32 %v1662_v17, %v4633_v31 }
 0xcb2   :  { %1678 = vadd.xlane.f32.xlu1 %v1677_v19 }
 0xcb3   :  { %v1674_v12 = vsel %vm147_vm2, %v1670_v20, 0.0 }
 0xcb4   :  { %1675 = vadd.xlane.f32.xlu0 %v1674_v12 }
 0xd3b   :  { %v1679_v21 = vpop.xlane.xlu1 %1678 }
 0xd3c   :  { %v1682_v22 = vmul.f32 0.03125, %v1679_v21 }
 0xd3d   :  { %v1676_v23 = vpop.xlane.xlu0 %1675 }
 0xd3e   :  { %v1681_v24 = vmul.f32 0.03125, %v1676_v23  ;;  %v4819_v25 = vsub.f32 %v1671_v18, %v1682_v22 }
 0xd40   :  { %v4821_v26 = vsub.f32 %v1670_v20, %v1681_v24  ;;  %v1686_v31 = vmul.f32 %v4819_v25, %v4819_v25 }
 0xd42   :  { %v1685_v27 = vmul.f32 %v4821_v26, %v4821_v26  ;;  %v1690_v28 = vsel %vm147_vm2, %v1686_v31, 0.0 }
 0xd44   :  { %v1687_v32 = vsel %vm147_vm2, %v1685_v27, 0.0 }
 0xd45   :  { %1688 = vadd.xlane.f32.xlu0 %v1687_v32 }
 0xd49   :  { %1691 = vadd.xlane.f32.xlu0 %v1690_v28 }
 0xdce   :  { %v1689_v50 = vpop.xlane.xlu0 %1688 }
 0xdcf   :  { %v1693_v51 = vmul.f32 0.03125, %v1689_v50  ;;  %v3893_v50 = vld [vmem:[#allocation2 + $0x1d0] ss:$0 sm:$0xff] }
 0xdd1   :  { %v1695_v52 = vadd.f32 1e-05, %v1693_v51 }
 0xdd2   :  { %v1692_v53 = vpop.xlane.xlu0 %1691 }
 0xdd3   :  { %4492 = vrsqrt.f32 %v1695_v52  ;;  %v1694_v54 = vmul.f32 0.03125, %v1692_v53 }
 0xdd5   :  { %v1696_v55 = vadd.f32 1e-05, %v1694_v54  ;;  %v3894_v54 = vld [vmem:[#allocation2 + $0x1f8] ss:$0 sm:$0xff] }
 0xdd7   :  { %4494 = vrsqrt.f32 %v1696_v55 }
 0xde0   :  { %v4493_v56 = vpop.eup %4492 }
 0xde1   :  { %v1699_v58 = vmul.f32 %v4493_v56, %v4821_v26 }
 0xde3   :  { %v1705_v59 = vmul.f32 %v3886_v57, %v1699_v58 }
 0xde4   :  { %v4495_v60 = vpop.eup %4494 }
 0xde5   :  { %v1700_v61 = vmul.f32 %v4495_v60, %v4819_v25  ;;  %v1711_v62 = vadd.f32 %v3887_v38, %v1705_v59 }
 0xde7   :  { %v1706_v63 = vmul.f32 %v3886_v57, %v1700_v61  ;;  %4240 = vmatprep.mubr.msk.f32.mxu1 %vm147_vm2, %v1711_v62 }
 0xde9   :  { %v1712_v0 = vadd.f32 %v3887_v38, %v1706_v63 }
 0xdeb   :  { %4241 = vmatmul.mubr.msk.f32.vlgmr.msra.gmra.mxu1 %vm147_vm2, %v1712_v0 }
 0xdec   :  { %4279 = vmatpush3.msra.mxu1 %v1946_v29 }
 0xded   :  { %4280 = vmatprep.subr.mxu1 %v1945_v30 }
 0xdee   :  { %4281 = vmatpush3.msra.mxu1 %v1945_v30 }
 0xdef   :  { %4282 = vmatprep.subr.mxu1 %v1944_v34 }
 0xdf0   :  { %4283 = vmatpush3.msra.mxu1 %v1944_v34 }
 0xdf1   :  { %4284 = vmatprep.subr.mxu1 %v1943_v35 }
 0xdf2   :  { %4285 = vmatpush3.msra.mxu1 %v1943_v35 }
 0xdf3   :  { %4289 = vmatprep.subr.mxu1 %v4589_v33 }
 0xeab   :  { %v4242_v6 = vpop.f32.mrf.mxu1 }
 0xeac   :  { %v1800_v7 = vadd.f32 %v4242_v6, %v3888_v5 }
 0xead   :  { %v1794_v8 = vpop.f32.mrf.mxu1 }
 0xeae   :  { %v1795_v9 = vadd.f32 %v3888_v5, %v1794_v8  ;;  %v1804_v13 = vmax.f32 %v1800_v7, 0.0 }
 0xeb0   :  { %v1803_v11 = vmax.f32 %v1795_v9, 0.0 }
 0xeb2   :  { %4275 = vmatprep.mubr.f32.mxu0 %v1803_v11 }
 0xeb3   :  { %4276 = vmatmul.mubr.f32.vlgmr.msra.gmra.mxu0 %v1804_v13 }
 0xeb4   :  { %4321 = vmatprep.mubr.msk.f32.mxu0 %vm4590_vm3, %v4589_v33 }
 0xf73   :  { %v4277_v14 = vpop.f32.mrf.mxu0 }
 0xf74   :  { %v1898_v15 = vadd.f32 %v4277_v14, %v3891_v10 }
 0xf75   :  { %v1892_v16 = vpop.f32.mrf.mxu0 }
 0xf76   :  { %v1893_v17 = vadd.f32 %v3891_v10, %v1892_v16  ;;  %v1902_v18 = vadd.f32 %v1898_v15, %v1712_v0 }
 0xf78   :  { %v1908_v19 = vsel %vm147_vm2, %v1902_v18, 0.0  ;;  %v1901_v20 = vadd.f32 %v1893_v17, %v1711_v62 }
 0xf79   :  { %1909 = vadd.xlane.f32.xlu0 %v1908_v19 }
 0xf7a   :  { %v1905_v12 = vsel %vm147_vm2, %v1901_v20, 0.0 }
 0xf7b   :  { %1906 = vadd.xlane.f32.xlu1 %v1905_v12 }
0x1002   :  { %v1910_v21 = vpop.xlane.xlu0 %1909 }
0x1003   :  { %v1912_v22 = vmul.f32 0.03125, %v1910_v21 }
0x1004   :  { %v1907_v23 = vpop.xlane.xlu1 %1906 }
0x1005   :  { %v1914_v24 = vsub.f32 %v1902_v18, %v1912_v22  ;;  %v1911_v25 = vmul.f32 0.03125, %v1907_v23 }
0x1007   :  { %v1913_v26 = vsub.f32 %v1901_v20, %v1911_v25  ;;  %v1916_v27 = vmul.f32 %v1914_v24, %v1914_v24 }
0x1009   :  { %v1920_v32 = vsel %vm147_vm2, %v1916_v27, 0.0  ;;  %v1915_v31 = vmul.f32 %v1913_v26, %v1913_v26 }
0x100a   :  { %1921 = vadd.xlane.f32.xlu0 %v1920_v32 }
0x100b   :  { %v1917_v28 = vsel %vm147_vm2, %v1915_v31, 0.0 }
0x100c   :  { %1918 = vadd.xlane.f32.xlu1 %v1917_v28 }
0x1093   :  { %v1922_v36 = vpop.xlane.xlu0 %1921 }
0x1094   :  { %v1924_v39 = vmul.f32 0.03125, %v1922_v36 }
0x1095   :  { %v1919_v40 = vpop.xlane.xlu1 %1918 }
0x1096   :  { %v1926_v41 = vadd.f32 1e-05, %v1924_v39  ;;  %v1923_v42 = vmul.f32 0.03125, %v1919_v40 }
0x1098   :  { %4496 = vrsqrt.f32 %v1926_v41  ;;  %v1925_v44 = vadd.f32 1e-05, %v1923_v42 }
0x109a   :  { %4498 = vrsqrt.f32 %v1925_v44 }
0x10a5   :  { %v4497_v45 = vpop.eup %4496 }
0x10a6   :  { %v1930_v47 = vmul.f32 %v4497_v45, %v1914_v24 }
0x10a7   :  { %v4499_v37 = vpop.eup %4498 }
0x10a8   :  { %v1929_v48 = vmul.f32 %v4499_v37, %v1913_v26  ;;  %v1936_v49 = vmul.f32 %v3892_v46, %v1930_v47 }
0x10aa   :  { %v1935_v51 = vmul.f32 %v3892_v46, %v1929_v48  ;;  %v4843_v53 = vadd.f32 %v3893_v50, %v1936_v49 }
0x10ac   :  { %v4841_v52 = vadd.f32 %v3893_v50, %v1935_v51 }
0x10ae   :  { %4286 = vmatprep.mubr.msk.f32.mxu1 %vm147_vm2, %v4841_v52 }
0x10af   :  { %4287 = vmatmul.mubr.msk.f32.vlgmr.msra.gmra.mxu1 %vm147_vm2, %v4843_v53 }
0x10b0   :  { %4291 = vmatprep.mubr.msk.f32.mxu1 %vm4590_vm3, %v4589_v33 }
0x116f   :  { %v4288_v55 = vpop.f32.mrf.mxu1 }
0x1170   :  { %v4851_v56 = vadd.f32 %v4288_v55, %v3894_v54 }
0x1171   :  { %v2024_v57 = vpop.f32.mrf.mxu1 }
0x1172   :  { %v4853_v58 = vadd.f32 %v3894_v54, %v2024_v57  ;;  %2111 = vrot.lane.b32.xlu0 %v4851_v56, %s4591_s0 }
0x1174   :  { %2034 = vrot.lane.b32.xlu1 %v4853_v58, %s4591_s0 }
0x11e4   :  { %v2112_v59 = vpop.permute.xlu0 %2111 }
0x11e6   :  { %v2035_v38 = vpop.permute.xlu1 %2034 }
0x11e7   :  { %4290 = vmatpush3.xpose.msk.msra.mxu1 %vm232_vm4, %v2035_v38 }
0x11e8   :  { %4294 = vmatprep.subr.mxu1 %v4589_v33 }
0x11ea   :  { %4292 = vmatmul.mubr.msk.f32.vlgmr.msra.gmra.mxu1 %vm232_vm4, %v4853_v58 }
0x11eb   :  { %4295 = vmatpush3.xpose.msk.msra.mxu1 %vm232_vm4, %v2112_v59  ;;  %4296 = vmatprep.mubr.msk.f32.mxu1 %vm4590_vm3, %v4589_v33 }
0x11ec   :  { %4299 = vmatprep.subr.mxu1 %v4589_v33 }
0x11ee   :  { %4297 = vmatmul.mubr.msk.f32.vlgmr.msra.gmra.mxu1 %vm232_vm4, %v4851_v56 }
0x11ef   :  { %4301 = vmatprep.mubr.msk.f32.mxu1 %vm4590_vm3, %v4589_v33 }
0x12aa   :  { %v2106_v60 = vpop.f32.mrf.mxu1 }
0x12ab   :  { %v2107_v61 = vadd.f32 %v2106_v60, %v4667_v43 }
0x12ac   :  { %v4293_v62 = vpop.f32.mrf.mxu1 }
0x12ad   :  { %v2187_v63 = vsel %vm232_vm4, %v2107_v61, -inf }
0x12ae   :  { %2188 = vmax.xlane.f32.xlu1 %v2187_v63  ;;  %v2183_v0 = vpop.f32.mrf.mxu1 }
0x12af   :  { %v2184_v1 = vadd.f32 %v2183_v0, %v4667_v43 }
0x12b0   :  { %v4298_v2 = vpop.f32.mrf.mxu1 }
0x12b1   :  { %v2190_v3 = vsel %vm232_vm4, %v2184_v1, -inf }
0x12b2   :  { %2191 = vmax.xlane.f32.xlu0 %v2190_v3 }
0x12bf   :  { %2209 = vrot.lane.b32.xlu1 %v4853_v58, %s4593_s1 }
0x1337   :  { %v2189_v4 = vpop.xlane.xlu1 %2188 }
0x1338   :  { %v2193_v5 = vsub.f32 %v2107_v61, %v2189_v4 }
0x133a   :  { %v2195_v6 = vmul.f32 1.442695, %v2193_v5 }
0x133b   :  { %v2210_v7 = vpop.permute.xlu1 %2209  ;;  %v2192_v8 = vpop.xlane.xlu0 %2191 }
0x133c   :  { %4500 = vpow2.f32 %v2195_v6  ;;  %v2194_v9 = vsub.f32 %v2184_v1, %v2192_v8  ;;  %4300 = vmatpush3.msra.mxu1 %v2210_v7 }
0x133d   :  { %4304 = vmatprep.subr.mxu1 %v4589_v33 }
0x133e   :  { %v2197_v11 = vmul.f32 1.442695, %v2194_v9 }
0x1340   :  { %4502 = vpow2.f32 %v2197_v11 }
0x1349   :  { %v4501_v13 = vpop.eup %4500 }
0x134a   :  { %v2199_v10 = vsel %vm232_vm4, %v4501_v13, 0.0 }
0x134b   :  { %2200 = vadd.xlane.f32.xlu1 %v2199_v10 }
0x134d   :  { %v4503_v14 = vpop.eup %4502 }
0x134e   :  { %v2202_v15 = vsel %vm232_vm4, %v4503_v14, 0.0 }
0x134f   :  { %2203 = vadd.xlane.f32.xlu0 %v2202_v15 }
0x135c   :  { %2363 = vrot.lane.b32.xlu1 %v4853_v58, %s4594_s20 }
0x1360   :  { %2361 = vrot.lane.b32.xlu1 %v4853_v58, %s4595_s21 }
0x1364   :  { %2439 = vrot.lane.b32.xlu1 %v4851_v56, %s4595_s21 }
0x1365   :  { %2285 = vrot.lane.b32.xlu0 %v4851_v56, %s4593_s1 }
0x1369   :  { %2441 = vrot.lane.b32.xlu0 %v4851_v56, %s4594_s20 }
0x13d4   :  { %v2201_v16 = vpop.xlane.xlu1 %2200 }
0x13d5   :  { %4504 = vrcp.f32 %v2201_v16 }
0x13d8   :  { %v2204_v17 = vpop.xlane.xlu0 %2203  ;;  %v2364_v20 = vpop.permute.xlu1 %2363 }
0x13d9   :  { %4506 = vrcp.f32 %v2204_v17 }
0x13dc   :  { %v2286_v12 = vpop.permute.xlu0 %2285  ;;  %v2362_v23 = vpop.permute.xlu1 %2361 }
0x13e0   :  { %v2442_v24 = vpop.permute.xlu0 %2441  ;;  %v2440_v25 = vpop.permute.xlu1 %2439 }
0x13e2   :  { %v4505_v18 = vpop.eup %4504 }
0x13e3   :  { %v2207_v19 = vmul.f32 %v4505_v18, %v4501_v13 }
0x13e5   :  { %4302 = vmatmul.mubr.msk.f32.vlgmr.msra.gmra.mxu1 %vm232_vm4, %v2207_v19 }
0x13e6   :  { %v4507_v21 = vpop.eup %4506  ;;  %4305 = vmatpush3.msra.mxu1 %v2286_v12  ;;  %4306 = vmatprep.mubr.msk.f32.mxu1 %vm4590_vm3, %v4589_v33 }
0x13e7   :  { %4309 = vmatprep.subr.mxu1 %v4589_v33  ;;  %v2208_v22 = vmul.f32 %v4507_v21, %v4503_v14 }
0x13e9   :  { %4307 = vmatmul.mubr.msk.f32.vlgmr.msra.gmra.mxu1 %vm232_vm4, %v2208_v22 }
0x13ea   :  { %4310 = vmatpush3.xpose.msk.msra.mxu1 %vm232_vm4, %v2364_v20  ;;  %4311 = vmatprep.mubr.msk.f32.mxu1 %vm4590_vm3, %v4589_v33 }
0x13eb   :  { %4314 = vmatprep.subr.mxu1 %v4589_v33 }
0x13ed   :  { %4312 = vmatmul.mubr.msk.f32.vlgmr.msra.gmra.mxu1 %vm232_vm4, %v2362_v23 }
0x13ee   :  { %4315 = vmatpush3.xpose.msk.msra.mxu1 %vm232_vm4, %v2442_v24  ;;  %4316 = vmatprep.mubr.msk.f32.mxu1 %vm4590_vm3, %v4589_v33 }
0x13ef   :  { %4324 = vmatprep.subr.mxu1 %v4589_v33 }
0x13f1   :  { %4317 = vmatmul.mubr.msk.f32.vlgmr.msra.gmra.mxu1 %vm232_vm4, %v2440_v25 }
0x13f2   :  { %4326 = vmatprep.mubr.msk.f32.mxu1 %vm4590_vm3, %v4589_v33 }
0x14a5   :  { %v4907_v26 = vpop.f32.mrf.mxu1 }
0x14a7   :  { %v4303_v27 = vpop.f32.mrf.mxu1 }
0x14a9   :  { %v4909_v32 = vpop.f32.mrf.mxu1 }
0x14ab   :  { %v4308_v31 = vpop.f32.mrf.mxu1 }
0x14ad   :  { %v2435_v28 = vpop.f32.mrf.mxu1 }
0x14ae   :  { %v2436_v29 = vadd.f32 %v2435_v28, %v4667_v43 }
0x14af   :  { %v4313_v30 = vpop.f32.mrf.mxu1 }
0x14b0   :  { %v2517_v34 = vsel %vm232_vm4, %v2436_v29, -inf }
0x14b1   :  { %2518 = vmax.xlane.f32.xlu0 %v2517_v34  ;;  %v2513_v35 = vpop.f32.mrf.mxu1 }
0x14b2   :  { %v2514_v36 = vadd.f32 %v2513_v35, %v4667_v43 }
0x14b3   :  { %v4318_v39 = vpop.f32.mrf.mxu1 }
0x14b4   :  { %v2520_v40 = vsel %vm232_vm4, %v2514_v36, -inf }
0x14b5   :  { %2521 = vmax.xlane.f32.xlu1 %v2520_v40 }
0x14c6   :  { %2539 = vrot.lane.b32.xlu1 %v4853_v58, %s4596_s22 }
0x14c7   :  { %2615 = vrot.lane.b32.xlu0 %v4851_v56, %s4596_s22 }
0x14ca   :  { %2693 = vrot.lane.b32.xlu1 %v4853_v58, %s4597_s23 }
0x14ce   :  { %2771 = vrot.lane.b32.xlu1 %v4851_v56, %s4597_s23 }
0x14d2   :  { %2769 = vrot.lane.b32.xlu1 %v4851_v56, %s4598_s24 }
0x153a   :  { %v2519_v41 = vpop.xlane.xlu0 %2518 }
0x153b   :  { %v2523_v42 = vsub.f32 %v2436_v29, %v2519_v41 }
0x153d   :  { %v2525_v44 = vmul.f32 1.442695, %v2523_v42 }
0x153e   :  { %v2616_v45 = vpop.permute.xlu0 %2615  ;;  %v2522_v46 = vpop.xlane.xlu1 %2521 }
0x153f   :  { %4508 = vpow2.f32 %v2525_v44  ;;  %v2524_v47 = vsub.f32 %v2514_v36, %v2522_v46  ;;  %4325 = vmatpush3.msra.mxu1 %v2616_v45 }
0x1540   :  { %4334 = vmatprep.subr.mxu1 %v4589_v33 }
0x1541   :  { %v2527_v37 = vmul.f32 1.442695, %v2524_v47 }
0x1542   :  { %v2540_v48 = vpop.permute.xlu1 %2539 }
0x1543   :  { %4510 = vpow2.f32 %v2527_v37  ;;  %4320 = vmatpush3.msra.mxu0 %v2540_v48 }
0x1544   :  { %4329 = vmatprep.subr.mxu0 %v4589_v33 }
0x1546   :  { %v2694_v38 = vpop.permute.xlu1 %2693 }
0x154a   :  { %v2772_v62 = vpop.permute.xlu1 %2771 }
0x154c   :  { %v4509_v49 = vpop.eup %4508 }
0x154d   :  { %v2529_v50 = vsel %vm232_vm4, %v4509_v49, 0.0 }
0x154e   :  { %2530 = vadd.xlane.f32.xlu0 %v2529_v50  ;;  %v2770_v1 = vpop.permute.xlu1 %2769 }
0x1550   :  { %v4511_v51 = vpop.eup %4510 }
0x1551   :  { %v2532_v54 = vsel %vm232_vm4, %v4511_v51, 0.0 }
0x1552   :  { %2533 = vadd.xlane.f32.xlu0 %v2532_v54 }
0x1568   :  { %2691 = vrot.lane.b32.xlu0 %v4853_v58, %s4598_s24 }
0x15d7   :  { %v2531_v55 = vpop.xlane.xlu0 %2530 }
0x15d8   :  { %4512 = vrcp.f32 %v2531_v55 }
0x15db   :  { %v2534_v57 = vpop.xlane.xlu0 %2533 }
0x15dc   :  { %4514 = vrcp.f32 %v2534_v57 }
0x15df   :  { %v2692_v0 = vpop.permute.xlu0 %2691 }
0x15e5   :  { %v4513_v59 = vpop.eup %4512 }
0x15e6   :  { %v2537_v60 = vmul.f32 %v4513_v59, %v4509_v49 }
0x15e8   :  { %4322 = vmatmul.mubr.msk.f32.vlgmr.msra.gmra.mxu0 %vm232_vm4, %v2537_v60 }
0x15e9   :  { %v4515_v61 = vpop.eup %4514  ;;  %4330 = vmatpush3.xpose.msk.msra.mxu0 %vm232_vm4, %v2694_v38  ;;  %4331 = vmatprep.mubr.msk.f32.mxu0 %vm4590_vm3, %v4589_v33 }
0x15ea   :  { %v2538_v63 = vmul.f32 %v4515_v61, %v4511_v51  ;;  %4339 = vmatprep.subr.mxu0 %v4589_v33 }
0x15ec   :  { %4327 = vmatmul.mubr.msk.f32.vlgmr.msra.gmra.mxu1 %vm232_vm4, %v2538_v63  ;;  %4332 = vmatmul.mubr.msk.f32.vlgmr.msra.gmra.mxu0 %vm232_vm4, %v2692_v0 }
0x15ed   :  { %4335 = vmatpush3.xpose.msk.msra.mxu1 %vm232_vm4, %v2772_v62  ;;  %4336 = vmatprep.mubr.msk.f32.mxu1 %vm4590_vm3, %v4589_v33 }
0x15ee   :  { %4344 = vmatprep.subr.mxu1 %v4589_v33  ;;  %4341 = vmatprep.mubr.msk.f32.mxu0 %vm4590_vm3, %v4589_v33 }
0x15f0   :  { %4337 = vmatmul.mubr.msk.f32.vlgmr.msra.gmra.mxu1 %vm232_vm4, %v2770_v1 }
0x15f1   :  { %4346 = vmatprep.mubr.msk.f32.mxu1 %vm4590_vm3, %v4589_v33 }
0x16a8   :  { %v4947_v2 = vpop.f32.mrf.mxu0 }
0x16aa   :  { %v4323_v3 = vpop.f32.mrf.mxu0 }
0x16ac   :  { %v4949_v4 = vpop.f32.mrf.mxu1  ;;  %v2765_v5 = vpop.f32.mrf.mxu0 }
0x16ad   :  { %v2766_v6 = vadd.f32 %v2765_v5, %v4667_v43 }
0x16ae   :  { %v4328_v7 = vpop.f32.mrf.mxu1  ;;  %v4333_v8 = vpop.f32.mrf.mxu0 }
0x16af   :  { %v2847_v9 = vsel %vm232_vm4, %v2766_v6, -inf  ;;  %v3384_v7 = vld [vmem:[#allocation2 + $0x218] sm:$0xff]  ;;  %v3383_v8 = vld [vmem:[#allocation2 + $0x210] sm:$0xff] }
0x16b0   :  { %2848 = vmax.xlane.f32.xlu0 %v2847_v9  ;;  %v2843_v11 = vpop.f32.mrf.mxu1  ;;  %v3381_v9 = vld [vmem:[#allocation2 + $0x200] sm:$0xff] }
0x16b1   :  { %v2844_v13 = vadd.f32 %v2843_v11, %v4667_v43 }
0x16b2   :  { %v4338_v10 = vpop.f32.mrf.mxu1 }
0x16b3   :  { %v2850_v14 = vsel %vm232_vm4, %v2844_v13, -inf }
0x16b4   :  { %2851 = vmax.xlane.f32.xlu1 %v2850_v14 }
0x16c5   :  { %2869 = vrot.lane.b32.xlu1 %v4853_v58, %s4599_s25 }
0x16c6   :  { %2945 = vrot.lane.b32.xlu0 %v4851_v56, %s4599_s25 }
0x16c9   :  { %3023 = vrot.lane.b32.xlu1 %v4853_v58, %s4600_s26 }
0x16cd   :  { %3101 = vrot.lane.b32.xlu1 %v4851_v56, %s4600_s26 }
0x16d1   :  { %3099 = vrot.lane.b32.xlu1 %v4851_v56, %s4601_s27 }
0x1739   :  { %v2849_v15 = vpop.xlane.xlu0 %2848 }
0x173a   :  { %v2853_v16 = vsub.f32 %v2766_v6, %v2849_v15 }
0x173c   :  { %v2855_v17 = vmul.f32 1.442695, %v2853_v16 }
0x173d   :  { %v2946_v18 = vpop.permute.xlu0 %2945  ;;  %v2852_v19 = vpop.xlane.xlu1 %2851 }
0x173e   :  { %4516 = vpow2.f32 %v2855_v17  ;;  %v2854_v20 = vsub.f32 %v2844_v13, %v2852_v19  ;;  %4345 = vmatpush3.msra.mxu1 %v2946_v18 }
0x173f   :  { %4354 = vmatprep.subr.mxu1 %v4589_v33 }
0x1740   :  { %v2857_v12 = vmul.f32 1.442695, %v2854_v20 }
0x1741   :  { %v2870_v21 = vpop.permute.xlu1 %2869 }
0x1742   :  { %4518 = vpow2.f32 %v2857_v12  ;;  %4340 = vmatpush3.msra.mxu0 %v2870_v21 }
0x1743   :  { %4349 = vmatprep.subr.mxu0 %v4589_v33 }
0x1745   :  { %v3024_v28 = vpop.permute.xlu1 %3023 }
0x1749   :  { %v3102_v35 = vpop.permute.xlu1 %3101 }
0x174b   :  { %v4517_v22 = vpop.eup %4516 }
0x174c   :  { %v2859_v23 = vsel %vm232_vm4, %v4517_v22, 0.0 }
0x174d   :  { %2860 = vadd.xlane.f32.xlu0 %v2859_v23  ;;  %v3100_v40 = vpop.permute.xlu1 %3099 }
0x174f   :  { %v4519_v24 = vpop.eup %4518 }
0x1750   :  { %v2862_v25 = vsel %vm232_vm4, %v4519_v24, 0.0 }
0x1751   :  { %2863 = vadd.xlane.f32.xlu0 %v2862_v25 }
0x1767   :  { %3021 = vrot.lane.b32.xlu0 %v4853_v58, %s4601_s27 }
0x17d6   :  { %v2861_v27 = vpop.xlane.xlu0 %2860 }
0x17d7   :  { %4520 = vrcp.f32 %v2861_v27  ;;  %v3921_v27 = vld [vmem:[#allocation2 + $0x220] ss:$0 sm:$0xff] }
0x17da   :  { %v2864_v31 = vpop.xlane.xlu0 %2863 }
0x17db   :  { %4522 = vrcp.f32 %v2864_v31 }
0x17de   :  { %v3022_v39 = vpop.permute.xlu0 %3021 }
0x17e4   :  { %v4521_v29 = vpop.eup %4520 }
0x17e5   :  { %v2867_v30 = vmul.f32 %v4521_v29, %v4517_v22 }
0x17e7   :  { %4342 = vmatmul.mubr.msk.f32.vlgmr.msra.gmra.mxu0 %vm232_vm4, %v2867_v30 }
0x17e8   :  { %v4523_v34 = vpop.eup %4522  ;;  %4350 = vmatpush3.xpose.msk.msra.mxu0 %vm232_vm4, %v3024_v28  ;;  %4351 = vmatprep.mubr.msk.f32.mxu0 %vm4590_vm3, %v4589_v33 }
0x17e9   :  { %v2868_v36 = vmul.f32 %v4523_v34, %v4519_v24  ;;  %4359 = vmatprep.subr.mxu0 %v4589_v33 }
0x17eb   :  { %4347 = vmatmul.mubr.msk.f32.vlgmr.msra.gmra.mxu1 %vm232_vm4, %v2868_v36  ;;  %4352 = vmatmul.mubr.msk.f32.vlgmr.msra.gmra.mxu0 %vm232_vm4, %v3022_v39 }
0x17ec   :  { %4355 = vmatpush3.xpose.msk.msra.mxu1 %vm232_vm4, %v3102_v35  ;;  %4356 = vmatprep.mubr.msk.f32.mxu1 %vm4590_vm3, %v4589_v33 }
0x17ed   :  { %4364 = vmatprep.subr.mxu1 %v4589_v33  ;;  %4361 = vmatprep.mubr.msk.f32.mxu0 %vm4590_vm3, %v4589_v33 }
0x17ef   :  { %4357 = vmatmul.mubr.msk.f32.vlgmr.msra.gmra.mxu1 %vm232_vm4, %v3100_v40 }
0x17f0   :  { %4366 = vmatprep.mubr.msk.f32.mxu1 %vm4590_vm3, %v4589_v33 }
0x18a7   :  { %v2941_v41 = vpop.f32.mrf.mxu0 }
0x18a9   :  { %v4343_v42 = vpop.f32.mrf.mxu0 }
0x18ab   :  { %v3017_v44 = vpop.f32.mrf.mxu1  ;;  %v3095_v45 = vpop.f32.mrf.mxu0 }
0x18ac   :  { %v3096_v46 = vadd.f32 %v3095_v45, %v4667_v43 }
0x18ad   :  { %v4348_v47 = vpop.f32.mrf.mxu1  ;;  %v4353_v37 = vpop.f32.mrf.mxu0 }
0x18ae   :  { %v3177_v48 = vsel %vm232_vm4, %v3096_v46, -inf  ;;  %v3516_v47 = vld [vmem:[#allocation2 + $0x250] sm:$0xff]  ;;  %v3515_v37 = vld [vmem:[#allocation2 + $0x248] sm:$0xff] }
0x18af   :  { %3178 = vmax.xlane.f32.xlu0 %v3177_v48  ;;  %v3173_v49 = vpop.f32.mrf.mxu1  ;;  %v3514_v48 = vld [vmem:[#allocation2 + $0x240] sm:$0xff] }
0x18b0   :  { %v3174_v50 = vadd.f32 %v3173_v49, %v4667_v43  ;;  %v3513_v49 = vld [vmem:[#allocation2 + $0x238] sm:$0xff] }
0x18b1   :  { %v4358_v51 = vpop.f32.mrf.mxu1 }
0x18b2   :  { %v3180_v54 = vsel %vm232_vm4, %v3174_v50, -inf  ;;  %v3619_v51 = vld [vmem:[#allocation2 + $0x2d0] sm:$0xff] }
0x18b3   :  { %3181 = vmax.xlane.f32.xlu1 %v3180_v54  ;;  %v3618_v54 = vld [vmem:[#allocation2 + $0x2c8] sm:$0xff] }
0x18c4   :  { %3199 = vrot.lane.b32.xlu1 %v4853_v58, %s4602_s28 }
0x18c8   :  { %3353 = vrot.lane.b32.xlu1 %v4947_v2, %s4586_s13 }
0x18cc   :  { %3355 = vrot.lane.b32.xlu1 %v4949_v4, %s4586_s13 }
0x18d0   :  { %3363 = vrot.lane.b32.xlu1 %v3017_v44, %s4603_s29 }
0x1938   :  { %v3179_v33 = vpop.xlane.xlu0 %3178 }
0x1939   :  { %v3183_v55 = vsub.f32 %v3096_v46, %v3179_v33  ;;  %v3617_v33 = vld [vmem:[#allocation2 + $0x2c0] sm:$0xff] }
0x193b   :  { %v3185_v57 = vmul.f32 1.442695, %v3183_v55  ;;  %v3616_v55 = vld [vmem:[#allocation2 + $0x2b8] sm:$0xff] }
0x193c   :  { %v3182_v38 = vpop.xlane.xlu1 %3181 }
0x193d   :  { %4524 = vpow2.f32 %v3185_v57  ;;  %v3184_v43 = vsub.f32 %v3174_v50, %v3182_v38  ;;  %v3620_v50 = vld [vmem:[#allocation2 + $0x2d8] sm:$0xff]  ;;  %v3615_v57 = vld [vmem:[#allocation2 + $0x2b0] sm:$0xff]  ;;  %v3614_v38 = vld [vmem:[#allocation2 + $0x2a8] sm:$0xff] }
0x193f   :  { %v3187_v59 = vmul.f32 1.442695, %v3184_v43  ;;  %v3613_v43 = vld [vmem:[#allocation2 + $0x2a0] sm:$0xff] }
0x1940   :  { %v3200_v60 = vpop.permute.xlu1 %3199 }
0x1941   :  { %4526 = vpow2.f32 %v3187_v59  ;;  %4360 = vmatpush3.msra.mxu0 %v3200_v60  ;;  %v3612_v59 = vld [vmem:[#allocation2 + $0x298] sm:$0xff]  ;;  %v3611_v60 = vld [vmem:[#allocation2 + $0x290] sm:$0xff] }
0x1942   :  { %4369 = vmatprep.subr.mxu0 %v3384_v7 }
0x1944   :  { %v3354_v15 = vpop.permute.xlu1 %3353 }
0x1945   :  { %v3375_v18 = vsel %vm232_vm4, %v4907_v26, %v3354_v15  ;;  %v3607_v15 = vld [vmem:[#allocation2 + $0x270] sm:$0xff] }
0x1948   :  { %v3356_v16 = vpop.permute.xlu1 %3355 }
0x1949   :  { %v3376_v22 = vsel %vm232_vm4, %v4909_v32, %v3356_v16  ;;  %v3606_v16 = vld [vmem:[#allocation2 + $0x268] sm:$0xff] }
0x194a   :  { %v4525_v61 = vpop.eup %4524 }
0x194b   :  { %v3189_v58 = vsel %vm232_vm4, %v4525_v61, 0.0 }
0x194c   :  { %3190 = vadd.xlane.f32.xlu0 %v3189_v58  ;;  %v3364_v19 = vpop.permute.xlu1 %3363  ;;  %v3609_v58 = vld [vmem:[#allocation2 + $0x280] sm:$0xff] }
0x194d   :  { %v3378_v23 = vsel %vm1574_vm7, %v3376_v22, %v3364_v19 }
0x194e   :  { %v4527_v62 = vpop.eup %4526 }
0x194f   :  { %v3192_v63 = vsel %vm232_vm4, %v4527_v62, 0.0 }
0x1950   :  { %3193 = vadd.xlane.f32.xlu0 %v3192_v63 }
0x1966   :  { %3275 = vrot.lane.b32.xlu0 %v4851_v56, %s4602_s28  ;;  %v3382_v56 = vld [vmem:[#allocation2 + $0x208] sm:$0xff] }
0x196a   :  { %3361 = vrot.lane.b32.xlu0 %v2941_v41, %s4603_s29 }
0x19d5   :  { %v3191_v0 = vpop.xlane.xlu0 %3190 }
0x19d6   :  { %4528 = vrcp.f32 %v3191_v0 }
0x19d9   :  { %v3194_v1 = vpop.xlane.xlu0 %3193 }
0x19da   :  { %4530 = vrcp.f32 %v3194_v1 }
0x19dd   :  { %v3276_v2 = vpop.permute.xlu0 %3275 }
0x19de   :  { %4365 = vmatpush3.msra.mxu1 %v3276_v2 }
0x19df   :  { %4380 = vmatprep.subr.mxu1 %v3516_v47 }
0x19e1   :  { %v3362_v17 = vpop.permute.xlu0 %3361 }
0x19e2   :  { %v3377_v20 = vsel %vm1574_vm7, %v3375_v18, %v3362_v17  ;;  %v3605_v17 = vld [vmem:[#allocation2 + $0x260] sm:$0xff]  ;;  %v3926_v18 = vld [vmem:[#allocation2 + $0x258] ss:$0 sm:$0xff] }
0x19e3   :  { %v4529_v3 = vpop.eup %4528 }
0x19e4   :  { %v3197_v4 = vmul.f32 %v4529_v3, %v4525_v61  ;;  %v3610_v61 = vld [vmem:[#allocation2 + $0x288] sm:$0xff] }
0x19e6   :  { %4362 = vmatmul.mubr.msk.f32.vlgmr.msra.gmra.mxu0 %vm232_vm4, %v3197_v4 }
0x19e7   :  { %v4531_v5 = vpop.eup %4530  ;;  %4370 = vmatpush3.msra.mxu0 %v3384_v7  ;;  %v3925_v7 = vld [vmem:[#allocation2 + $0x230] ss:$0 sm:$0xff] }
0x19e8   :  { %v3198_v6 = vmul.f32 %v4531_v5, %v4527_v62  ;;  %4371 = vmatprep.subr.mxu0 %v3383_v8  ;;  %v3924_v5 = vld [vmem:[#allocation2 + $0x228] ss:$0 sm:$0xff] }
0x19e9   :  { %4372 = vmatpush3.msra.mxu0 %v3383_v8 }
0x19ea   :  { %4367 = vmatmul.mubr.msk.f32.vlgmr.msra.gmra.mxu1 %vm232_vm4, %v3198_v6  ;;  %4373 = vmatprep.subr.mxu0 %v3382_v56 }
0x19eb   :  { %4374 = vmatpush3.msra.mxu0 %v3382_v56  ;;  %4381 = vmatpush3.msra.mxu1 %v3516_v47  ;;  %v3744_v47 = vld [vmem:[#allocation2 + $0x98] sm:$0xff] }
0x19ec   :  { %4375 = vmatprep.subr.mxu0 %v3381_v9  ;;  %4382 = vmatprep.subr.mxu1 %v3515_v37 }
0x19ed   :  { %4376 = vmatpush3.msra.mxu0 %v3381_v9  ;;  %4383 = vmatpush3.msra.mxu1 %v3515_v37  ;;  %v3743_v37 = vld [vmem:[#allocation2 + $0x90] sm:$0xff] }
0x19ee   :  { %4384 = vmatprep.subr.mxu1 %v3514_v48  ;;  %4391 = vmatprep.subr.mxu0 %v3620_v50 }
0x19ef   :  { %4385 = vmatpush3.msra.mxu1 %v3514_v48 }
0x19f0   :  { %4386 = vmatprep.subr.mxu1 %v3513_v49 }
0x19f1   :  { %4387 = vmatpush3.msra.mxu1 %v3513_v49 }
0x1aa6   :  { %v3271_v11 = vpop.f32.mrf.mxu0 }
0x1aa7   :  { %3369 = vrot.lane.b32.xlu0 %v3271_v11, %s4604_s30 }
0x1aa8   :  { %v4363_v13 = vpop.f32.mrf.mxu0 }
0x1aaa   :  { %v3347_v10 = vpop.f32.mrf.mxu1 }
0x1aab   :  { %3371 = vrot.lane.b32.xlu1 %v3347_v10, %s4604_s30 }
0x1aac   :  { %v4368_v14 = vpop.f32.mrf.mxu1 }
0x1aad   :  { %v3608_v14 = vld [vmem:[#allocation2 + $0x278] sm:$0xff] }
0x1b19   :  { %v3370_v12 = vpop.permute.xlu0 %3369 }
0x1b1a   :  { %v3379_v21 = vsel %vm1577_vm6, %v3377_v20, %v3370_v12 }
0x1b1b   :  { %4377 = vmatprep.mubr.msk.f32.mxu0 %vm147_vm2, %v3379_v21 }
0x1b1d   :  { %v3372_v24 = vpop.permute.xlu1 %3371 }
0x1b1e   :  { %v3380_v25 = vsel %vm1577_vm6, %v3378_v23, %v3372_v24  ;;  %v3929_v24 = vld [vmem:[#allocation2 + $0x2e0] ss:$0 sm:$0xff] }
0x1b1f   :  { %4378 = vmatmul.mubr.msk.f32.vlgmr.msra.gmra.mxu0 %vm147_vm2, %v3380_v25 }
0x1b20   :  { %4392 = vmatpush3.msra.mxu0 %v3620_v50 }
0x1b21   :  { %4393 = vmatprep.subr.mxu0 %v3619_v51 }
0x1b22   :  { %4394 = vmatpush3.msra.mxu0 %v3619_v51 }
0x1b23   :  { %4395 = vmatprep.subr.mxu0 %v3618_v54 }
0x1b24   :  { %4396 = vmatpush3.msra.mxu0 %v3618_v54 }
0x1b25   :  { %4397 = vmatprep.subr.mxu0 %v3617_v33 }
0x1b26   :  { %4398 = vmatpush3.msra.mxu0 %v3617_v33 }
0x1b27   :  { %4399 = vmatprep.subr.mxu0 %v3616_v55 }
0x1b28   :  { %4400 = vmatpush3.msra.mxu0 %v3616_v55 }
0x1b29   :  { %4401 = vmatprep.subr.mxu0 %v3615_v57 }
0x1b2a   :  { %4402 = vmatpush3.msra.mxu0 %v3615_v57  ;;  %v3930_v57 = vld [vmem:[#allocation2 + $0x2e8] ss:$0 sm:$0xff] }
0x1b2b   :  { %4403 = vmatprep.subr.mxu0 %v3614_v38 }
0x1b2c   :  { %4404 = vmatpush3.msra.mxu0 %v3614_v38 }
0x1b2d   :  { %4405 = vmatprep.subr.mxu0 %v3613_v43 }
0x1b2e   :  { %4406 = vmatpush3.msra.mxu0 %v3613_v43 }
0x1b2f   :  { %4407 = vmatprep.subr.mxu0 %v3612_v59 }
0x1b30   :  { %4408 = vmatpush3.msra.mxu0 %v3612_v59 }
0x1b31   :  { %4409 = vmatprep.subr.mxu0 %v3611_v60 }
0x1b32   :  { %4410 = vmatpush3.msra.mxu0 %v3611_v60 }
0x1b33   :  { %4411 = vmatprep.subr.mxu0 %v3610_v61 }
0x1b34   :  { %4412 = vmatpush3.msra.mxu0 %v3610_v61  ;;  %v3931_v61 = vld [vmem:[#allocation2 + $0x2f0] ss:$0 sm:$0xff] }
0x1b35   :  { %4413 = vmatprep.subr.mxu0 %v3609_v58 }
0x1b36   :  { %4414 = vmatpush3.msra.mxu0 %v3609_v58 }
0x1b37   :  { %4415 = vmatprep.subr.mxu0 %v3608_v14 }
0x1b38   :  { %4416 = vmatpush3.msra.mxu0 %v3608_v14 }
0x1b39   :  { %4417 = vmatprep.subr.mxu0 %v3607_v15 }
0x1b3a   :  { %4418 = vmatpush3.msra.mxu0 %v3607_v15 }
0x1b3b   :  { %4419 = vmatprep.subr.mxu0 %v3606_v16 }
0x1b3c   :  { %4420 = vmatpush3.msra.mxu0 %v3606_v16 }
0x1b3d   :  { %4421 = vmatprep.subr.mxu0 %v3605_v17 }
0x1b3e   :  { %4422 = vmatpush3.msra.mxu0 %v3605_v17 }
0x1bdf   :  { %v4379_v26 = vpop.f32.mrf.mxu0 }
0x1be0   :  { %v3468_v31 = vadd.f32 %v4379_v26, %v3921_v27 }
0x1be1   :  { %v3462_v28 = vpop.f32.mrf.mxu0 }
0x1be2   :  { %v3472_v29 = vadd.f32 %v3468_v31, %v4843_v53  ;;  %v3463_v30 = vadd.f32 %v3921_v27, %v3462_v28 }
0x1be4   :  { %v3471_v34 = vadd.f32 %v3463_v30, %v4841_v52  ;;  %v3478_v35 = vsel %vm147_vm2, %v3472_v29, 0.0 }
0x1be5   :  { %3479 = vadd.xlane.f32.xlu1 %v3478_v35 }
0x1be6   :  { %v3475_v32 = vsel %vm147_vm2, %v3471_v34, 0.0 }
0x1be7   :  { %3476 = vadd.xlane.f32.xlu0 %v3475_v32 }
0x1c6e   :  { %v3480_v36 = vpop.xlane.xlu1 %3479 }
0x1c6f   :  { %v3482_v39 = vmul.f32 0.03125, %v3480_v36 }
0x1c70   :  { %v3477_v40 = vpop.xlane.xlu0 %3476 }
0x1c71   :  { %v3481_v41 = vmul.f32 0.03125, %v3477_v40  ;;  %v5021_v42 = vsub.f32 %v3472_v29, %v3482_v39 }
0x1c73   :  { %v5023_v44 = vsub.f32 %v3471_v34, %v3481_v41  ;;  %v3486_v52 = vmul.f32 %v5021_v42, %v5021_v42 }
0x1c75   :  { %v3485_v53 = vmul.f32 %v5023_v44, %v5023_v44  ;;  %v3490_v46 = vsel %vm147_vm2, %v3486_v52, 0.0  ;;  %v3746_v52 = vld [vmem:[#allocation2 + $0xa8] sm:$0xff] }
0x1c76   :  { %4426 = vmatprep.subr.mxu1 %v3746_v52 }
0x1c77   :  { %v3487_v45 = vsel %vm147_vm2, %v3485_v53, 0.0 }
0x1c78   :  { %3488 = vadd.xlane.f32.xlu0 %v3487_v45 }
0x1c7c   :  { %3491 = vadd.xlane.f32.xlu0 %v3490_v46  ;;  %v3745_v46 = vld [vmem:[#allocation2 + $0xa0] sm:$0xff] }
0x1d01   :  { %v3489_v62 = vpop.xlane.xlu0 %3488 }
0x1d02   :  { %v3493_v63 = vmul.f32 0.03125, %v3489_v62 }
0x1d04   :  { %v3495_v0 = vadd.f32 1e-05, %v3493_v63 }
0x1d05   :  { %v3492_v1 = vpop.xlane.xlu0 %3491 }
0x1d06   :  { %4532 = vrsqrt.f32 %v3495_v0  ;;  %v3494_v2 = vmul.f32 0.03125, %v3492_v1  ;;  %v3932_v0 = vld [vmem:[#allocation2 + $0xb0] ss:$0 sm:$0xff] }
0x1d08   :  { %v3496_v3 = vadd.f32 1e-05, %v3494_v2 }
0x1d0a   :  { %4534 = vrsqrt.f32 %v3496_v3 }
0x1d13   :  { %v4533_v4 = vpop.eup %4532 }
0x1d14   :  { %v3499_v6 = vmul.f32 %v4533_v4, %v5023_v44 }
0x1d16   :  { %v3505_v8 = vmul.f32 %v3924_v5, %v3499_v6 }
0x1d17   :  { %v4535_v56 = vpop.eup %4534 }
0x1d18   :  { %v3500_v9 = vmul.f32 %v4535_v56, %v5021_v42  ;;  %v3511_v11 = vadd.f32 %v3925_v7, %v3505_v8 }
0x1d1a   :  { %v3506_v13 = vmul.f32 %v3924_v5, %v3500_v9  ;;  %4388 = vmatprep.mubr.msk.f32.mxu1 %vm147_vm2, %v3511_v11 }
0x1d1c   :  { %v3512_v10 = vadd.f32 %v3925_v7, %v3506_v13 }
0x1d1e   :  { %4389 = vmatmul.mubr.msk.f32.vlgmr.msra.gmra.mxu1 %vm147_vm2, %v3512_v10 }
0x1d1f   :  { %4427 = vmatpush3.msra.mxu1 %v3746_v52 }
0x1d20   :  { %4428 = vmatprep.subr.mxu1 %v3745_v46 }
0x1d21   :  { %4429 = vmatpush3.msra.mxu1 %v3745_v46 }
0x1d22   :  { %4430 = vmatprep.subr.mxu1 %v3744_v47 }
0x1d23   :  { %4431 = vmatpush3.msra.mxu1 %v3744_v47 }
0x1d24   :  { %4432 = vmatprep.subr.mxu1 %v3743_v37 }
0x1d25   :  { %4433 = vmatpush3.msra.mxu1 %v3743_v37 }
0x1dde   :  { %v4390_v19 = vpop.f32.mrf.mxu1 }
0x1ddf   :  { %v3600_v20 = vadd.f32 %v4390_v19, %v3926_v18 }
0x1de0   :  { %v3594_v12 = vpop.f32.mrf.mxu1 }
0x1de1   :  { %v3595_v21 = vadd.f32 %v3926_v18, %v3594_v12  ;;  %v3604_v23 = vmax.f32 %v3600_v20, 0.0 }
0x1de3   :  { %v3603_v22 = vmax.f32 %v3595_v21, 0.0 }
0x1de5   :  { %4423 = vmatprep.mubr.f32.mxu0 %v3603_v22 }
0x1de6   :  { %4424 = vmatmul.mubr.f32.vlgmr.msra.gmra.mxu0 %v3604_v23 }
0x1ea6   :  { %v4425_v25 = vpop.f32.mrf.mxu0 }
0x1ea7   :  { %v3698_v27 = vadd.f32 %v4425_v25, %v3929_v24 }
0x1ea8   :  { %v3692_v26 = vpop.f32.mrf.mxu0 }
0x1ea9   :  { %v3702_v31 = vadd.f32 %v3698_v27, %v3512_v10  ;;  %v3693_v28 = vadd.f32 %v3929_v24, %v3692_v26 }
0x1eab   :  { %v3701_v29 = vadd.f32 %v3693_v28, %v3511_v11  ;;  %v3708_v30 = vsel %vm147_vm2, %v3702_v31, 0.0 }
0x1eac   :  { %3709 = vadd.xlane.f32.xlu0 %v3708_v30 }
0x1ead   :  { %v3705_v34 = vsel %vm147_vm2, %v3701_v29, 0.0 }
0x1eae   :  { %3706 = vadd.xlane.f32.xlu1 %v3705_v34 }
0x1f35   :  { %v3710_v35 = vpop.xlane.xlu0 %3709 }
0x1f36   :  { %v3712_v32 = vmul.f32 0.03125, %v3710_v35 }
0x1f37   :  { %v3707_v36 = vpop.xlane.xlu1 %3706 }
0x1f38   :  { %v3714_v39 = vsub.f32 %v3702_v31, %v3712_v32  ;;  %v3711_v40 = vmul.f32 0.03125, %v3707_v36 }
0x1f3a   :  { %v3713_v41 = vsub.f32 %v3701_v29, %v3711_v40  ;;  %v3716_v42 = vmul.f32 %v3714_v39, %v3714_v39 }
0x1f3c   :  { %v3720_v44 = vsel %vm147_vm2, %v3716_v42, 0.0  ;;  %v3715_v53 = vmul.f32 %v3713_v41, %v3713_v41 }
0x1f3d   :  { %3721 = vadd.xlane.f32.xlu0 %v3720_v44 }
0x1f3e   :  { %v3717_v45 = vsel %vm147_vm2, %v3715_v53, 0.0 }
0x1f3f   :  { %3718 = vadd.xlane.f32.xlu1 %v3717_v45 }
0x1fc6   :  { %v3722_v48 = vpop.xlane.xlu0 %3721 }
0x1fc7   :  { %v3724_v49 = vmul.f32 0.03125, %v3722_v48 }
0x1fc8   :  { %v3719_v50 = vpop.xlane.xlu1 %3718 }
0x1fc9   :  { %v3726_v51 = vadd.f32 1e-05, %v3724_v49  ;;  %v3723_v54 = vmul.f32 0.03125, %v3719_v50 }
0x1fcb   :  { %4536 = vrsqrt.f32 %v3726_v51  ;;  %v3725_v33 = vadd.f32 1e-05, %v3723_v54 }
0x1fcd   :  { %4538 = vrsqrt.f32 %v3725_v33 }
0x1fd8   :  { %v4537_v55 = vpop.eup %4536 }
0x1fd9   :  { %v3730_v38 = vmul.f32 %v4537_v55, %v3714_v39 }
0x1fda   :  { %v4539_v43 = vpop.eup %4538 }
0x1fdb   :  { %v3729_v59 = vmul.f32 %v4539_v43, %v3713_v41  ;;  %v3736_v60 = vmul.f32 %v3930_v57, %v3730_v38 }
0x1fdd   :  { %v3735_v58 = vmul.f32 %v3930_v57, %v3729_v59  ;;  %v3742_v63 = vadd.f32 %v3931_v61, %v3736_v60 }
0x1fdf   :  { %v3741_v62 = vadd.f32 %v3931_v61, %v3735_v58 }
0x1fe1   :  { %4434 = vmatprep.mubr.msk.f32.mxu1 %vm147_vm2, %v3741_v62 }
0x1fe2   :  { %4435 = vmatmul.mubr.msk.f32.vlgmr.msra.gmra.mxu1 %vm147_vm2, %v3742_v63 }
0x20a2   :  { %v4436_v1 = vpop.f32.mrf.mxu1 }
0x20a3   :  { %v3830_v2 = vadd.f32 %v4436_v1, %v3932_v0 }
0x20a4   :  { %v3824_v3 = vpop.f32.mrf.mxu1 }
0x20a5   :  { %3834 = vst [vmem:[#allocation5 + $0x8] sm:$0xff] %v3830_v2  ;;  %v3825_v4 = vadd.f32 %v3932_v0, %v3824_v3 }
0x20a7   :  { %3833 = vst [vmem:[#allocation5] sm:$0xff] %v3825_v4 }
0x20a8   :  { %4571 = shalt.err (!%p4568_p9)
}
0x20a9   :  { %3846 = dma.vmem_to_hbm [thread:$0]  %s3841_s4, 256, %s5049_s2, [#allocation4], %s4585_s12, %s4585_s12, %s4586_s13  }
0x20aa   :  { %4582 = dma.done.wait [#allocation4], 256  }
0x20ab   :  { %4583 = vsyncadd [#allocation4], 4294967040 }
0x20ac   :  { %3850 = vsyncpa [#allocation3], 1 }
0x20ad   :  { %3851 = vsyncpa [#allocation4], 1 }

</bundles_post_ra>
